<compile_context>
chip_gen: v7x
topology: tpu7x:2x2x1
jax: 0.10.0
libtpu: 0.0.40
codegen_flags: <defaults>
</compile_context>

<pallas_src>
import functools

import jax
import jax.numpy as jnp
from jax.experimental import pallas as pl
from jax.experimental.pallas import tpu as pltpu

B_HEADS = 5                 # leading dim of weight1
K_IN = 10                   # input feature dim
M_OUT = 10                  # per-head output feature dim
BM = B_HEADS * M_OUT        # 50: flattened (head-major) output width

TILE_N_DEFAULT = 2048       # rows of x per grid step (multiple of 128; sweep
                            # 2048-8192 per generation, keep <=8192 on v7x)


def _model1d_kernel(x_ref, wt_ref, bt_ref, s_ref, o_ref, *, bf16_sigmoid):
    """o[h, n] = sum_m sigmoid(W_T @ x_n + b)[h*M_OUT + m]  (lane axis = n)."""
    x = x_ref[...]                                          # (TN, K)  f32
    # Contract the feature axes of W_T (50, K) and x (TN, K) -> (50, TN).
    # Keeps N on the 128-lane axis; MXU handles the transposed-rhs form.
    y_t = jax.lax.dot_general(
        wt_ref[...], x,
        dimension_numbers=(((1,), (1,)), ((), ())),
        preferred_element_type=jnp.float32)                 # (BM, TN)
    y_t = y_t + bt_ref[...]                                 # (BM, 1) broadcast
    # sigmoid(z) = 0.5 * (tanh(z / 2) + 1): single EUP transcendental.
    z = 0.5 * y_t
    if bf16_sigmoid:
        # v6e/v7x: packed bf16 halves EUP pushes; re-validate tolerances.
        sig = jnp.tanh(z.astype(jnp.bfloat16)).astype(jnp.float32)
    else:
        sig = jnp.tanh(z)                                   # (BM, TN) f32
    sig = sig * 0.5 + 0.5
    # Per-head sum folded into a tiny MXU matmul: out[h, n] = sum_s S[h,s]*sig[s,n].
    out = jnp.dot(s_ref[...], sig,
                  preferred_element_type=jnp.float32)       # (B_HEADS, TN)
    o_ref[...] = out.astype(o_ref.dtype)


def model1d_forward(x, weight1, bias1, *, tile_n=TILE_N_DEFAULT,
                    bf16_sigmoid=False):
    """x: (N, 10) f32 -> prediction: (N, 5) f32 (matches the torch module)."""
    n = x.shape[0]
    grid_n = pl.cdiv(n, tile_n)   # ragged last block: Pallas clips the writeback

    # W_T[h*M_OUT + m, k] = weight1[h, k, m]  -> (50, 10)
    w_t = jnp.transpose(weight1, (0, 2, 1)).reshape(BM, K_IN)
    # b_T[h*M_OUT + m] = bias1[h, 0, m]       -> (50, 1)
    b_t = bias1.reshape(BM, 1)
    # Block-diagonal ones "head-sum" matrix: S[h, s] = 1 iff s // M_OUT == h.
    s_mat = (jnp.arange(BM, dtype=jnp.int32) // M_OUT ==
             jnp.arange(B_HEADS, dtype=jnp.int32)[:, None]).astype(jnp.float32)

    kernel = functools.partial(_model1d_kernel, bf16_sigmoid=bf16_sigmoid)

    out_bn = pl.pallas_call(
        kernel,
        out_shape=jax.ShapeDtypeStruct((B_HEADS, n), jnp.float32),
        grid=(grid_n,),
        in_specs=[
            pl.BlockSpec((tile_n, K_IN), lambda i: (i, 0)),   # streamed over N
            pl.BlockSpec((BM, K_IN), lambda i: (0, 0)),       # resident weight
            pl.BlockSpec((BM, 1), lambda i: (0, 0)),          # resident bias
            pl.BlockSpec((B_HEADS, BM), lambda i: (0, 0)),    # resident head-sum
        ],
        out_specs=pl.BlockSpec((B_HEADS, tile_n), lambda i: (0, i)),
        compiler_params=pltpu.CompilerParams(
            dimension_semantics=("parallel",)),
    )(x, w_t, b_t, s_mat)

    # Torch module returns (N, 5); the kernel emits lane-dense (5, N).
    # Skip this transpose if the downstream consumer accepts (5, N).
    return out_bn.T


def _reference(x, weight1, bias1):
    """Pure-JAX reference mirroring the torch code literally."""
    layer1 = jnp.matmul(x, weight1) + bias1            # (5, N, 10)
    layer1 = jax.nn.sigmoid(layer1)
    layer1 = jnp.transpose(layer1, (1, 0, 2))          # (N, 5, 10)
    return jnp.sum(layer1, axis=2)                     # (N, 5)


if __name__ == "__main__":
    key = jax.random.PRNGKey(0)
    k_x, k_w, k_b = jax.random.split(key, 3)

    N = 3000   # exercises multi-tile (grid_n=2) + ragged last block
    x = jax.random.normal(k_x, (N, K_IN), dtype=jnp.float32)

    # Deterministic parameter init (module's __init__ uses torch.randn).
    weight1 = jax.random.normal(k_w, (B_HEADS, K_IN, M_OUT), dtype=jnp.float32)
    # TODO(synk): bias1 is referenced in forward() but never defined in
    # __init__; initialized here with shape (5, 1, 10) so it broadcasts.
    bias1 = jax.random.normal(k_b, (B_HEADS, 1, M_OUT), dtype=jnp.float32)

    pred = model1d_forward(x, weight1, bias1)
    pred = jax.block_until_ready(pred)

    ref = _reference(x, weight1, bias1)
    assert pred.shape == (N, B_HEADS), pred.shape
    max_err = float(jnp.max(jnp.abs(pred - ref)))
    assert jnp.allclose(pred, ref, atol=1e-4, rtol=1e-4), max_err

    print("KERNEL_OK")
</pallas_src>

<mosaic_0001>
module attributes {stable_mosaic.version = 11 : i64} {
  func.func @_model1d_kernel(%arg0: i32, %arg1: memref<2048x10xf32, #tpu.memory_space<vmem>>, %arg2: memref<50x10xf32, #tpu.memory_space<vmem>>, %arg3: memref<50x1xf32, #tpu.memory_space<vmem>>, %arg4: memref<5x50xf32, #tpu.memory_space<vmem>>, %arg5: memref<5x2048xf32, #tpu.memory_space<vmem>>) attributes {dimension_semantics = [#tpu.dimension_semantics<parallel>], iteration_bounds = array<i64: 2>, scalar_prefetch = 0 : i64, scratch_operands = 0 : i64, tpu.core_type = #tpu.core_type<tc>, window_params = [{transform_indices = @transform_0, window_bounds = array<i64: 2048, 10>}, {pipeline_mode = #tpu.pipeline_mode<synchronous>, transform_indices = @transform_1, window_bounds = array<i64: 50, 10>}, {pipeline_mode = #tpu.pipeline_mode<synchronous>, transform_indices = @transform_2, window_bounds = array<i64: 50, 1>}, {pipeline_mode = #tpu.pipeline_mode<synchronous>, transform_indices = @transform_3, window_bounds = array<i64: 5, 50>}, {transform_indices = @transform_4, window_bounds = array<i64: 5, 2048>}]} {
    %c0 = arith.constant 0 : index
    %c0_0 = arith.constant 0 : index
    %0 = vector.load %arg1[%c0, %c0_0] : memref<2048x10xf32, #tpu.memory_space<vmem>>, vector<2048x10xf32>
    %c0_1 = arith.constant 0 : index
    %c0_2 = arith.constant 0 : index
    %1 = vector.load %arg2[%c0_1, %c0_2] : memref<50x10xf32, #tpu.memory_space<vmem>>, vector<50x10xf32>
    %cst = arith.constant dense<0.000000e+00> : vector<50x2048xf32>
    %2 = tpu.matmul %1, %0, %cst {dimension_numbers = #tpu.dot_dimension_numbers<[1], [1], [0], [0], [0, 0, 1, 0], [], []>} : vector<50x10xf32>, vector<2048x10xf32>, vector<50x2048xf32> -> vector<50x2048xf32>
    %c0_3 = arith.constant 0 : index
    %c0_4 = arith.constant 0 : index
    %3 = vector.load %arg3[%c0_3, %c0_4] : memref<50x1xf32, #tpu.memory_space<vmem>>, vector<50x1xf32>
    %4 = vector.broadcast %3 : vector<50x1xf32> to vector<50x2048xf32>
    %5 = arith.addf %2, %4 : vector<50x2048xf32>
    %cst_5 = arith.constant 5.000000e-01 : f32
    %6 = vector.broadcast %cst_5 : f32 to vector<50x2048xf32>
    %7 = arith.mulf %6, %5 : vector<50x2048xf32>
    %8 = math.tanh %7 : vector<50x2048xf32>
    %cst_6 = arith.constant 5.000000e-01 : f32
    %9 = vector.broadcast %cst_6 : f32 to vector<50x2048xf32>
    %10 = arith.mulf %8, %9 : vector<50x2048xf32>
    %cst_7 = arith.constant 5.000000e-01 : f32
    %11 = vector.broadcast %cst_7 : f32 to vector<50x2048xf32>
    %12 = arith.addf %10, %11 : vector<50x2048xf32>
    %c0_8 = arith.constant 0 : index
    %c0_9 = arith.constant 0 : index
    %13 = vector.load %arg4[%c0_8, %c0_9] : memref<5x50xf32, #tpu.memory_space<vmem>>, vector<5x50xf32>
    %cst_10 = arith.constant dense<0.000000e+00> : vector<5x2048xf32>
    %14 = tpu.matmul %13, %12, %cst_10 {dimension_numbers = #tpu.dot_dimension_numbers<[1], [0], [0], [1], [0, 0, 1, 1], [], []>} : vector<5x50xf32>, vector<50x2048xf32>, vector<5x2048xf32> -> vector<5x2048xf32>
    %c0_11 = arith.constant 0 : index
    %c0_12 = arith.constant 0 : index
    %15 = vector.load %arg5[%c0_11, %c0_12] : memref<5x2048xf32, #tpu.memory_space<vmem>>, vector<5x2048xf32>
    tpu.vector_store %arg5[%c0_11, %c0_12], %14 {strides = array<i32>} : memref<5x2048xf32, #tpu.memory_space<vmem>>, vector<5x2048xf32>,
    return
  }
  func.func @transform_0(%arg0: i32) -> (i32, i32) {
    %c0_i32 = arith.constant 0 : i32
    %c0_i32_0 = arith.constant 0 : i32
    return %arg0, %c0_i32 : i32, i32
  }
  func.func @transform_1(%arg0: i32) -> (i32, i32) {
    %c0_i32 = arith.constant 0 : i32
    %c0_i32_0 = arith.constant 0 : i32
    %c0_i32_1 = arith.constant 0 : i32
    return %c0_i32, %c0_i32_0 : i32, i32
  }
  func.func @transform_2(%arg0: i32) -> (i32, i32) {
    %c0_i32 = arith.constant 0 : i32
    %c0_i32_0 = arith.constant 0 : i32
    %c0_i32_1 = arith.constant 0 : i32
    return %c0_i32, %c0_i32_0 : i32, i32
  }
  func.func @transform_3(%arg0: i32) -> (i32, i32) {
    %c0_i32 = arith.constant 0 : i32
    %c0_i32_0 = arith.constant 0 : i32
    %c0_i32_1 = arith.constant 0 : i32
    return %c0_i32, %c0_i32_0 : i32, i32
  }
  func.func @transform_4(%arg0: i32) -> (i32, i32) {
    %c0_i32 = arith.constant 0 : i32
    %c0_i32_0 = arith.constant 0 : i32
    return %c0_i32, %arg0 : i32, i32
  }
}

</mosaic_0001>

<bundles_post_ra>
// kernel: tpu_custom_call.1
= control target key start
LH: loop header
LB: loop body
LE: loop exit
PB: predicated region body
PF: predicated region fallthrough
CT: control target
= control target key end

     0   :  { %9 = vsyncpa [#allocation3], 0  ;;  %s6074_s0 = inlined_call_operand.vmem [shape: f32[3000,10], index: 0, kind: input, shape index: {}]   ;;  %s6075_s1 = inlined_call_operand.vmem [shape: f32[50,10], index: 1, kind: input, shape index: {}]   ;;  %s6076_s2 = inlined_call_operand.vmem [shape: f32[50,1], index: 2, kind: input, shape index: {}]   ;;  %s6077_s3 = inlined_call_operand.vmem [shape: f32[5,50], index: 3, kind: input, shape index: {}]   ;;  %s6078_s4 = inlined_call_operand.hbm [shape: f32[5,3000], index: 4, kind: output, shape index: {}]  }
   0x1   :  { %11 = vsyncpa [#allocation3 + $0x1], 0  ;;  %s4901_s15 = smov 0   ;;  %s4903_s16 = smov 0  }
   0x2   :  { %s4905_s17 = smov 0   ;;  %s4907_s18 = smov 0  }
   0x3 LB: > { %s4922_s19 = sadd.s32 4294967295, %s4871_s18   ;;  %s3340_s20 = sadd.s32 4294967294, %s4871_s18   ;;  %s4871_s18 = sphi %s4907_s18, %s6086_s18   ;;  %s4867_s17 = sphi %s4905_s17, %s6085_s17   ;;  %s4863_s16 = sphi %s4903_s16, %s6084_s16   ;;  %s4859_s15 = sphi %s4901_s15, %s6083_s15  }
   0x4   : > { %s4926_s21 = sadd.s32 1, %s4871_s18   ;;  %s113_s22 = sadd.s32 1, %s4867_s17 }
   0x5   : > { %s110_s23 = ssub.s32 %s4871_s18, %s4926_s21  ;;  %p123_p0 = scmp.ne.s32.totalorder %s4867_s17, %s4863_s16 }
   0x6   : > { %p111_p1 = scmp.eq.s32.totalorder %s110_s23, 0  ;;  %p124_p2 = scmp.eq.s32.totalorder %s4922_s19, 1 }
   0x7   : > { %p129_p3 = scmp.ne.s32.totalorder %s4863_s16, %s4859_s15  ;;  %p130_p4 = scmp.eq.s32.totalorder %s3340_s20, 1 }
   0x8   : > { %s4937_s24 = scalar_select %p111_p1, %s4867_s17, %s113_s22  }
   0x9   : > { %p4939_p5 = por %p124_p2, %p123_p0  ;;  %p4943_p6 = por %p130_p4, %p129_p3 }
   0xa   : > { %p3343_p7 = scmp.ge.s32.totalorder %s4871_s18, 1  ;;  %p174_p8 = scmp.lt.s32.totalorder %s4871_s18, 3 }
   0xc   : > { %p175_p9 = pnand %p3343_p7, %p174_p8 }
   0xd   : > { %s3345_s27 = sshll.u32 (!%p175_p9), %s4922_s19, 8  ;;  %vm528_vm0 = vcmask (!%p175_p9), 80896   ;;  %v4953_v0 = vld [vmem:[%s6075_s1] sm:$0xff] (!%p175_p9)  ;;  %v4873_v50 = vmov (!%p175_p9), 0   ;;  %vm2627_vm2 = vcmask (!%p175_p9), 1041408   ;;  %vm2623_vm3 = vcmask (!%p175_p9), 408576  }
   0xe   : > { %178 = sbr.rel (%p175_p9) target bundleno = 791 (0x317), region = 36  ;;  %p209_p10 = scmp.lt.s32.totalorder (!%p175_p9), %s3345_s27, 374  ;;  %3725 = vmatprep.mubr.msk.f32.mxu0 (!%p175_p9), %vm528_vm0, %v4953_v0  ;;  %3771 = vmatprep.mubr.msk.f32.mxu1 (!%p175_p9), %vm528_vm0, %v4953_v0  ;;  %vm4966_vm1 = vmpackc.low (!%p175_p9), %vm528_vm0, %vm528_vm0 }
   0xf   : > { %4581 = vset.pattern.permute.xlu0 (!%p175_p9), %v4873_v50  ;;  %4582 = vset.pattern.permute.xlu1 (!%p175_p9), %v4873_v50 }
  0x15   : > { %s6088_s27 = smov (!%p209_p10, %s3345_s27), 374  ;;  %s3684_s11 = sshll.u32 (%p4939_p5), %s4922_s19, 4 }
  0x16   : > { %s3346_s30 = sshll.u32 %s6088_s27, 3  ;;  %s3269_s12 = ssub.s32 (%p4939_p5), 24, %s3684_s11 }
  0x17   : > { %s4962_s7 = scalar_lea.vmem %s6074_s0, %s3346_s30  ;;  %s201_s30 = sand.u32 1, %s4863_s16  }
  0x18   : > { %v239_v2 = vld [vmem:[%s4962_s7 + $0x80] sm:$0xff]  ;;  %v240_v3 = vld [vmem:[%s4962_s7 + $0x88] sm:$0xff]  ;;  %v241_v13 = vld [vmem:[%s4962_s7 + $0x90] sm:$0xff]  ;;  %s3344_s8 = sshll.u32 %s201_s30, 7  ;;  %s6019_s10 = scalar_lea.sflag [#allocation3], %s201_s30 }
  0x19   : > { %v271_v4 = vld [vmem:[%s4962_s7 + $0x180] sm:$0xff]  ;;  %v4061_v5 = vpack.c.bf16 %v240_v3, %v239_v2  ;;  %v272_v6 = vld [vmem:[%s4962_s7 + $0x188] sm:$0xff]  ;;  %v242_v15 = vld [vmem:[%s4962_s7 + $0x98] sm:$0xff]  ;;  %s5999_s9 = scalar_lea.vmem [#allocation2], %s3344_s8  ;;  %p3270_p11 = scmp.lt.s32.totalorder (%p4939_p5), %s3269_s12, 16 }
  0x1a   : > { %v223_v7 = vld [vmem:[%s4962_s7] sm:$0xff]  ;;  %v224_v8 = vld [vmem:[%s4962_s7 + $0x8] sm:$0xff]  ;;  %v4109_v9 = vpack.c.bf16 %v272_v6, %v271_v4  ;;  %v273_v16 = vld [vmem:[%s4962_s7 + $0x190] sm:$0xff]  ;;  %v4067_v18 = vpack.c.bf16 %v242_v15, %v241_v13 }
  0x1b   : > { %v4064_v10 = vpack.c.bf16 %v224_v8, %v223_v7  ;;  %v255_v11 = vld [vmem:[%s4962_s7 + $0x100] sm:$0xff]  ;;  %v256_v12 = vld [vmem:[%s4962_s7 + $0x108] sm:$0xff]  ;;  %4063 = vmatprep.subr.msk.bf16.mxu0 %vm4966_vm1, %v4061_v5  ;;  %v274_v17 = vld [vmem:[%s4962_s7 + $0x198] sm:$0xff] }
  0x1c   : > { %v4112_v14 = vpack.c.bf16 %v256_v12, %v255_v11  ;;  %4111 = vmatprep.subr.msk.bf16.mxu1 %vm4966_vm1, %v4109_v9  ;;  %v4115_v19 = vpack.c.bf16 %v274_v17, %v273_v16  ;;  %v225_v20 = vld [vmem:[%s4962_s7 + $0x10] sm:$0xff]  ;;  %v226_v21 = vld [vmem:[%s4962_s7 + $0x18] sm:$0xff]  ;;  %v243_v24 = vld [vmem:[%s4962_s7 + $0xa0] sm:$0xff] }
  0x1d   : > { %4066 = vmatpush3.bf16.xpose.msk.msra.mxu0 %vm4966_vm1, %v4064_v10  ;;  %v257_v22 = vld [vmem:[%s4962_s7 + $0x110] sm:$0xff]  ;;  %v258_v23 = vld [vmem:[%s4962_s7 + $0x118] sm:$0xff]  ;;  %v244_v25 = vld [vmem:[%s4962_s7 + $0xa8] sm:$0xff]  ;;  %v4070_v28 = vpack.c.bf16 %v226_v21, %v225_v20 }
  0x1e   : > { %4114 = vmatpush3.bf16.xpose.msk.msra.mxu1 %vm4966_vm1, %v4112_v14  ;;  %4069 = vmatprep.subr.msk.bf16.mxu0 %vm4966_vm1, %v4067_v18  ;;  %v275_v26 = vld [vmem:[%s4962_s7 + $0x1a0] sm:$0xff]  ;;  %v276_v27 = vld [vmem:[%s4962_s7 + $0x1a8] sm:$0xff]  ;;  %v4118_v29 = vpack.c.bf16 %v258_v23, %v257_v22  ;;  %v4073_v30 = vpack.c.bf16 %v244_v25, %v243_v24  ;;  %v245_v36 = vld [vmem:[%s4962_s7 + $0xb0] sm:$0xff] }
  0x1f   : > { %4117 = vmatprep.subr.msk.bf16.mxu1 %vm4966_vm1, %v4115_v19  ;;  %v4121_v31 = vpack.c.bf16 %v276_v27, %v275_v26  ;;  %v227_v32 = vld [vmem:[%s4962_s7 + $0x20] sm:$0xff]  ;;  %v228_v33 = vld [vmem:[%s4962_s7 + $0x28] sm:$0xff]  ;;  %v246_v37 = vld [vmem:[%s4962_s7 + $0xb8] sm:$0xff] }
  0x20   : > { %v259_v34 = vld [vmem:[%s4962_s7 + $0x120] sm:$0xff]  ;;  %v260_v35 = vld [vmem:[%s4962_s7 + $0x128] sm:$0xff]  ;;  %v277_v38 = vld [vmem:[%s4962_s7 + $0x1b0] sm:$0xff]  ;;  %v4076_v40 = vpack.c.bf16 %v228_v33, %v227_v32  ;;  %v4079_v42 = vpack.c.bf16 %v246_v37, %v245_v36 }
  0x21   : > { %v278_v39 = vld [vmem:[%s4962_s7 + $0x1b8] sm:$0xff]  ;;  %v4124_v41 = vpack.c.bf16 %v260_v35, %v259_v34  ;;  %v229_v44 = vld [vmem:[%s4962_s7 + $0x30] sm:$0xff]  ;;  %v247_v48 = vld [vmem:[%s4962_s7 + $0xc0] sm:$0xff] }
  0x22   : > { %v4127_v43 = vpack.c.bf16 %v278_v39, %v277_v38  ;;  %v230_v45 = vld [vmem:[%s4962_s7 + $0x38] sm:$0xff]  ;;  %v261_v46 = vld [vmem:[%s4962_s7 + $0x130] sm:$0xff]  ;;  %v248_v49 = vld [vmem:[%s4962_s7 + $0xc8] sm:$0xff] }
  0x23   : > { %v262_v47 = vld [vmem:[%s4962_s7 + $0x138] sm:$0xff]  ;;  %v279_v51 = vld [vmem:[%s4962_s7 + $0x1c0] sm:$0xff]  ;;  %v280_v52 = vld [vmem:[%s4962_s7 + $0x1c8] sm:$0xff]  ;;  %v4082_v53 = vpack.c.bf16 %v230_v45, %v229_v44  ;;  %v4085_v55 = vpack.c.bf16 %v248_v49, %v247_v48 }
  0x24   : > { %v4130_v54 = vpack.c.bf16 %v262_v47, %v261_v46  ;;  %v4133_v56 = vpack.c.bf16 %v280_v52, %v279_v51  ;;  %v231_v57 = vld [vmem:[%s4962_s7 + $0x40] sm:$0xff]  ;;  %v232_v58 = vld [vmem:[%s4962_s7 + $0x48] sm:$0xff]  ;;  %v249_v61 = vld [vmem:[%s4962_s7 + $0xd0] sm:$0xff] }
  0x25   : > { %4072 = vmatpush3.bf16.xpose.msk.msra.mxu0 %vm4966_vm1, %v4070_v28  ;;  %v263_v59 = vld [vmem:[%s4962_s7 + $0x140] sm:$0xff]  ;;  %v264_v60 = vld [vmem:[%s4962_s7 + $0x148] sm:$0xff]  ;;  %v250_v62 = vld [vmem:[%s4962_s7 + $0xd8] sm:$0xff]  ;;  %v4088_v3 = vpack.c.bf16 %v232_v58, %v231_v57 }
  0x26   : > { %4120 = vmatpush3.bf16.xpose.msk.msra.mxu1 %vm4966_vm1, %v4118_v29  ;;  %4075 = vmatprep.subr.msk.bf16.mxu0 %vm4966_vm1, %v4073_v30  ;;  %v281_v63 = vld [vmem:[%s4962_s7 + $0x1d0] sm:$0xff]  ;;  %v282_v2 = vld [vmem:[%s4962_s7 + $0x1d8] sm:$0xff]  ;;  %v4136_v4 = vpack.c.bf16 %v264_v60, %v263_v59  ;;  %v4091_v5 = vpack.c.bf16 %v250_v62, %v249_v61  ;;  %v251_v11 = vld [vmem:[%s4962_s7 + $0xe0] sm:$0xff] }
  0x27   : > { %4123 = vmatprep.subr.msk.bf16.mxu1 %vm4966_vm1, %v4121_v31  ;;  %v4139_v6 = vpack.c.bf16 %v282_v2, %v281_v63  ;;  %v233_v7 = vld [vmem:[%s4962_s7 + $0x50] sm:$0xff]  ;;  %v234_v8 = vld [vmem:[%s4962_s7 + $0x58] sm:$0xff]  ;;  %v252_v12 = vld [vmem:[%s4962_s7 + $0xe8] sm:$0xff] }
  0x28   : > { %v265_v9 = vld [vmem:[%s4962_s7 + $0x150] sm:$0xff]  ;;  %v266_v10 = vld [vmem:[%s4962_s7 + $0x158] sm:$0xff]  ;;  %v283_v13 = vld [vmem:[%s4962_s7 + $0x1e0] sm:$0xff]  ;;  %v4094_v15 = vpack.c.bf16 %v234_v8, %v233_v7  ;;  %v4097_v17 = vpack.c.bf16 %v252_v12, %v251_v11 }
  0x29   : > { %v284_v14 = vld [vmem:[%s4962_s7 + $0x1e8] sm:$0xff]  ;;  %v4142_v16 = vpack.c.bf16 %v266_v10, %v265_v9  ;;  %v235_v19 = vld [vmem:[%s4962_s7 + $0x60] sm:$0xff]  ;;  %v253_v23 = vld [vmem:[%s4962_s7 + $0xf0] sm:$0xff] }
  0x2a   : > { %v4145_v18 = vpack.c.bf16 %v284_v14, %v283_v13  ;;  %v236_v20 = vld [vmem:[%s4962_s7 + $0x68] sm:$0xff]  ;;  %v267_v21 = vld [vmem:[%s4962_s7 + $0x160] sm:$0xff]  ;;  %v254_v24 = vld [vmem:[%s4962_s7 + $0xf8] sm:$0xff] }
  0x2b   : > { %v268_v22 = vld [vmem:[%s4962_s7 + $0x168] sm:$0xff]  ;;  %v285_v25 = vld [vmem:[%s4962_s7 + $0x1f0] sm:$0xff]  ;;  %v286_v26 = vld [vmem:[%s4962_s7 + $0x1f8] sm:$0xff]  ;;  %v4100_v27 = vpack.c.bf16 %v236_v20, %v235_v19  ;;  %v4103_v29 = vpack.c.bf16 %v254_v24, %v253_v23 }
  0x2c   : > { %v4148_v28 = vpack.c.bf16 %v268_v22, %v267_v21  ;;  %v4151_v30 = vpack.c.bf16 %v286_v26, %v285_v25  ;;  %v486_v31 = vld [vmem:[%s6076_s2] sm:$0xff]  ;;  %v487_v32 = vld [vmem:[%s6076_s2 + $0x8] sm:$0xff]  ;;  %v237_v33 = vld [vmem:[%s4962_s7 + $0x70] sm:$0xff] }
  0x2d   : > { %4078 = vmatpush3.bf16.xpose.msk.msra.mxu0 %vm4966_vm1, %v4076_v40  ;;  %495 = vperm.xlu0 %4581, %v486_v31   ;;  %v238_v34 = vld [vmem:[%s4962_s7 + $0x78] sm:$0xff]  ;;  %v269_v35 = vld [vmem:[%s4962_s7 + $0x170] sm:$0xff]  ;;  %v303_v37 = vld [vmem:[%s4962_s7 + $0x280] sm:$0xff] }
  0x2e   : > { %4126 = vmatpush3.bf16.xpose.msk.msra.mxu1 %vm4966_vm1, %v4124_v41  ;;  %4081 = vmatprep.subr.msk.bf16.mxu0 %vm4966_vm1, %v4079_v42  ;;  %v270_v36 = vld [vmem:[%s4962_s7 + $0x178] sm:$0xff]  ;;  %v304_v38 = vld [vmem:[%s4962_s7 + $0x288] sm:$0xff]  ;;  %v335_v39 = vld [vmem:[%s4962_s7 + $0x380] sm:$0xff]  ;;  %v4106_v41 = vpack.c.bf16 %v238_v34, %v237_v33 }
  0x2f   : > { %4129 = vmatprep.subr.msk.bf16.mxu1 %vm4966_vm1, %v4127_v43  ;;  %v336_v40 = vld [vmem:[%s4962_s7 + $0x388] sm:$0xff]  ;;  %v4154_v42 = vpack.c.bf16 %v270_v36, %v269_v35  ;;  %v4157_v43 = vpack.c.bf16 %v304_v38, %v303_v37  ;;  %v287_v45 = vld [vmem:[%s4962_s7 + $0x200] sm:$0xff]  ;;  %v305_v49 = vld [vmem:[%s4962_s7 + $0x290] sm:$0xff] }
  0x30   : > { %v4205_v44 = vpack.c.bf16 %v336_v40, %v335_v39  ;;  %v288_v46 = vld [vmem:[%s4962_s7 + $0x208] sm:$0xff]  ;;  %v319_v47 = vld [vmem:[%s4962_s7 + $0x300] sm:$0xff]  ;;  %v306_v50 = vld [vmem:[%s4962_s7 + $0x298] sm:$0xff] }
  0x31   : > { %500 = vperm.xlu0 %4581, %v487_v32   ;;  %v320_v48 = vld [vmem:[%s4962_s7 + $0x308] sm:$0xff]  ;;  %v4160_v51 = vpack.c.bf16 %v288_v46, %v287_v45  ;;  %v337_v52 = vld [vmem:[%s4962_s7 + $0x390] sm:$0xff]  ;;  %v4163_v57 = vpack.c.bf16 %v306_v50, %v305_v49  ;;  %v290_v61 = vld [vmem:[%s4962_s7 + $0x218] sm:$0xff] }
  0x32   : > { %v289_v59 = vld [vmem:[%s4962_s7 + $0x210] sm:$0xff]  ;;  %v322_v63 = vld [vmem:[%s4962_s7 + $0x318] sm:$0xff]  ;;  %v307_v2 = vld [vmem:[%s4962_s7 + $0x2a0] sm:$0xff] }
  0x33   : > { %v5138_v60 = vld [vmem:[%s6075_s1 + $0x10] sm:$0xff]  ;;  %v4166_v7 = vpack.c.bf16 %v290_v61, %v289_v59  ;;  %v490_v10 = vld [vmem:[%s6076_s2 + $0x20] sm:$0xff]  ;;  %v5176_v12 = vld [vmem:[%s6075_s1 + $0x18] sm:$0xff] }
  0x34   : > { %v321_v62 = vld [vmem:[%s4962_s7 + $0x310] sm:$0xff]  ;;  %v291_v13 = vld [vmem:[%s4962_s7 + $0x220] sm:$0xff]  ;;  %v310_v19 = vld [vmem:[%s4962_s7 + $0x2b8] sm:$0xff] }
  0x35   : > { %4084 = vmatpush3.bf16.xpose.msk.msra.mxu0 %vm4966_vm1, %v4082_v53  ;;  %v338_v53 = vld [vmem:[%s4962_s7 + $0x398] sm:$0xff]  ;;  %v4214_v8 = vpack.c.bf16 %v322_v63, %v321_v62  ;;  %515 = vperm.xlu0 %4581, %v490_v10   ;;  %v5186_v14 = vld [vmem:[%s6075_s1 + $0x20] sm:$0xff]  ;;  %v491_v20 = vld [vmem:[%s6076_s2 + $0x28] sm:$0xff] }
  0x36   : > { %4132 = vmatpush3.bf16.xpose.msk.msra.mxu1 %vm4966_vm1, %v4130_v54  ;;  %4087 = vmatprep.subr.msk.bf16.mxu0 %vm4966_vm1, %v4085_v55  ;;  %v488_v54 = vld [vmem:[%s6076_s2 + $0x10] sm:$0xff]  ;;  %v4208_v55 = vpack.c.bf16 %v320_v48, %v319_v47  ;;  %v4211_v58 = vpack.c.bf16 %v338_v53, %v337_v52  ;;  %v342_v22 = vld [vmem:[%s4962_s7 + $0x3b8] sm:$0xff]  ;;  %v311_v34 = vld [vmem:[%s4962_s7 + $0x2c0] sm:$0xff] }
  0x37   : > { %4135 = vmatprep.subr.msk.bf16.mxu1 %vm4966_vm1, %v4133_v56  ;;  %505 = vperm.xlu1 %4582, %v488_v54   ;;  %v5126_v56 = vld [vmem:[%s6075_s1 + $0x8] sm:$0xff]  ;;  %v341_v21 = vld [vmem:[%s4962_s7 + $0x3b0] sm:$0xff]  ;;  %v294_v31 = vld [vmem:[%s4962_s7 + $0x238] sm:$0xff] }
  0x38   : > { %v492_v26 = vld [vmem:[%s6076_s2 + $0x30] sm:$0x3]  ;;  %v326_v33 = vld [vmem:[%s4962_s7 + $0x338] sm:$0xff]  ;;  %v312_v35 = vld [vmem:[%s4962_s7 + $0x2c8] sm:$0xff] }
  0x39   : > { %525 = vperm.xlu0 %4581, %v492_v26   ;;  %v325_v32 = vld [vmem:[%s4962_s7 + $0x330] sm:$0xff]  ;;  %v343_v36 = vld [vmem:[%s4962_s7 + $0x3c0] sm:$0xff]  ;;  %v344_v37 = vld [vmem:[%s4962_s7 + $0x3c8] sm:$0xff]  ;;  %v4181_v40 = vpack.c.bf16 %v312_v35, %v311_v34 }
  0x3a   : > { %v4226_v39 = vpack.c.bf16 %v326_v33, %v325_v32  ;;  %v328_v45 = vld [vmem:[%s4962_s7 + $0x348] sm:$0xff]  ;;  %v313_v46 = vld [vmem:[%s4962_s7 + $0x2d0] sm:$0xff]  ;;  %v314_v47 = vld [vmem:[%s4962_s7 + $0x2d8] sm:$0xff] }
  0x3b   : > { %v345_v48 = vld [vmem:[%s4962_s7 + $0x3d0] sm:$0xff]  ;;  %v346_v49 = vld [vmem:[%s4962_s7 + $0x3d8] sm:$0xff]  ;;  %v4187_v52 = vpack.c.bf16 %v314_v47, %v313_v46  ;;  %v315_v59 = vld [vmem:[%s4962_s7 + $0x2e0] sm:$0xff] }
  0x3c   : > { %v4235_v53 = vpack.c.bf16 %v346_v49, %v345_v48  ;;  %v297_v54 = vld [vmem:[%s4962_s7 + $0x250] sm:$0xff]  ;;  %v316_v61 = vld [vmem:[%s4962_s7 + $0x2e8] sm:$0xff]  ;;  %v347_v62 = vld [vmem:[%s4962_s7 + $0x3e0] sm:$0xff] }
  0x3d   : > { %4090 = vmatpush3.bf16.xpose.msk.msra.mxu0 %vm4966_vm1, %v4088_v3  ;;  %v308_v3 = vld [vmem:[%s4962_s7 + $0x2a8] sm:$0xff]  ;;  %v317_v10 = vld [vmem:[%s4962_s7 + $0x2f0] sm:$0xff]  ;;  %v399_v26 = vld [vmem:[%s4962_s7 + $0x580] sm:$0xff] }
  0x3e   : > { %4138 = vmatpush3.bf16.xpose.msk.msra.mxu1 %vm4966_vm1, %v4136_v4  ;;  %4093 = vmatprep.subr.msk.bf16.mxu0 %vm4966_vm1, %v4091_v5  ;;  %v489_v4 = vld [vmem:[%s6076_s2 + $0x18] sm:$0xff]  ;;  %v339_v5 = vld [vmem:[%s4962_s7 + $0x3a0] sm:$0xff]  ;;  %v4169_v9 = vpack.c.bf16 %v308_v3, %v307_v2  ;;  %v348_v63 = vld [vmem:[%s4962_s7 + $0x3e8] sm:$0xff] }
  0x3f   : > { %4141 = vmatprep.subr.msk.bf16.mxu1 %vm4966_vm1, %v4139_v6  ;;  %v340_v6 = vld [vmem:[%s4962_s7 + $0x3a8] sm:$0xff]  ;;  %510 = vperm.xlu1 %4582, %v489_v4   ;;  %v4193_v4 = vpack.c.bf16 %v316_v61, %v315_v59  ;;  %v351_v34 = vld [vmem:[%s4962_s7 + $0x400] sm:$0xff]  ;;  %v353_v46 = vld [vmem:[%s4962_s7 + $0x410] sm:$0xff] }
  0x40   : > { %v4217_v11 = vpack.c.bf16 %v340_v6, %v339_v5  ;;  %v4241_v5 = vpack.c.bf16 %v348_v63, %v347_v62  ;;  %v299_v6 = vld [vmem:[%s4962_s7 + $0x260] sm:$0xff]  ;;  %v352_v35 = vld [vmem:[%s4962_s7 + $0x408] sm:$0xff]  ;;  %v354_v47 = vld [vmem:[%s4962_s7 + $0x418] sm:$0xff] }
  0x41   : > { %v385_v48 = vld [vmem:[%s4962_s7 + $0x510] sm:$0xff]  ;;  %v386_v49 = vld [vmem:[%s4962_s7 + $0x518] sm:$0xff]  ;;  %v355_v59 = vld [vmem:[%s4962_s7 + $0x420] sm:$0xff] }
  0x42   : > { %v356_v61 = vld [vmem:[%s4962_s7 + $0x428] sm:$0xff]  ;;  %v387_v62 = vld [vmem:[%s4962_s7 + $0x520] sm:$0xff] }
  0x43   : > { %520 = vperm.xlu1 %4582, %v491_v20   ;;  %v301_v20 = vld [vmem:[%s4962_s7 + $0x270] sm:$0xff]  ;;  %v388_v63 = vld [vmem:[%s4962_s7 + $0x528] sm:$0xff] }
  0x45   : > { %4096 = vmatpush3.bf16.xpose.msk.msra.mxu0 %vm4966_vm1, %v4094_v15  ;;  %v292_v15 = vld [vmem:[%s4962_s7 + $0x228] sm:$0xff] }
  0x46   : > { %4144 = vmatpush3.bf16.xpose.msk.msra.mxu1 %vm4966_vm1, %v4142_v16  ;;  %4099 = vmatprep.subr.msk.bf16.mxu0 %vm4966_vm1, %v4097_v17  ;;  %v323_v16 = vld [vmem:[%s4962_s7 + $0x320] sm:$0xff]  ;;  %v324_v17 = vld [vmem:[%s4962_s7 + $0x328] sm:$0xff]  ;;  %v4172_v23 = vpack.c.bf16 %v292_v15, %v291_v13  ;;  %v349_v13 = vld [vmem:[%s4962_s7 + $0x3f0] sm:$0xff] }
  0x47   : > { %4147 = vmatprep.subr.msk.bf16.mxu1 %vm4966_vm1, %v4145_v18  ;;  %v309_v18 = vld [vmem:[%s4962_s7 + $0x2b0] sm:$0xff]  ;;  %v4220_v24 = vpack.c.bf16 %v324_v17, %v323_v16  ;;  %v350_v15 = vld [vmem:[%s4962_s7 + $0x3f8] sm:$0xff] }
  0x48   : > { %v4175_v25 = vpack.c.bf16 %v310_v19, %v309_v18  ;;  %v4247_v19 = vpack.c.bf16 %v350_v15, %v349_v13  ;;  %v389_v13 = vld [vmem:[%s4962_s7 + $0x530] sm:$0xff]  ;;  %v390_v15 = vld [vmem:[%s4962_s7 + $0x538] sm:$0xff] }
  0x4d   : > { %4102 = vmatpush3.bf16.xpose.msk.msra.mxu0 %vm4966_vm1, %v4100_v27  ;;  %v4223_v27 = vpack.c.bf16 %v342_v22, %v341_v21  ;;  %v302_v21 = vld [vmem:[%s4962_s7 + $0x278] sm:$0xff]  ;;  %v333_v22 = vld [vmem:[%s4962_s7 + $0x370] sm:$0xff] }
  0x4e   : > { %4150 = vmatpush3.bf16.xpose.msk.msra.mxu1 %vm4966_vm1, %v4148_v28  ;;  %4105 = vmatprep.subr.msk.bf16.mxu0 %vm4966_vm1, %v4103_v29  ;;  %v5224_v28 = vld [vmem:[%s6075_s1 + $0x28] sm:$0xff]  ;;  %v5233_v29 = vld [vmem:[%s6075_s1 + $0x30] sm:$0x3] }
  0x4f   : > { %4153 = vmatprep.subr.msk.bf16.mxu1 %vm4966_vm1, %v4151_v30  ;;  %v293_v30 = vld [vmem:[%s4962_s7 + $0x230] sm:$0xff] }
  0x50   : > { %v4178_v38 = vpack.c.bf16 %v294_v31, %v293_v30  ;;  %v4202_v30 = vpack.c.bf16 %v302_v21, %v301_v20  ;;  %v4322_v21 = vpack.c.bf16 %v390_v15, %v389_v13 }
  0x55   : > { %4108 = vmatpush3.bf16.xpose.msk.msra.mxu0 %vm4966_vm1, %v4106_v41  ;;  %v4229_v41 = vpack.c.bf16 %v344_v37, %v343_v36  ;;  %v383_v36 = vld [vmem:[%s4962_s7 + $0x500] sm:$0xff]  ;;  %v384_v37 = vld [vmem:[%s4962_s7 + $0x508] sm:$0xff] }
  0x56   : > { %4156 = vmatpush3.bf16.xpose.msk.msra.mxu1 %vm4966_vm1, %v4154_v42  ;;  %4159 = vmatprep.subr.msk.bf16.mxu0 %vm4966_vm1, %v4157_v43  ;;  %v295_v42 = vld [vmem:[%s4962_s7 + $0x240] sm:$0xff]  ;;  %v296_v43 = vld [vmem:[%s4962_s7 + $0x248] sm:$0xff] }
  0x57   : > { %4207 = vmatprep.subr.msk.bf16.mxu1 %vm4966_vm1, %v4205_v44  ;;  %v327_v44 = vld [vmem:[%s4962_s7 + $0x340] sm:$0xff]  ;;  %v4184_v50 = vpack.c.bf16 %v296_v43, %v295_v42  ;;  %v402_v42 = vld [vmem:[%s4962_s7 + $0x598] sm:$0xff]  ;;  %v4304_v43 = vpack.c.bf16 %v384_v37, %v383_v36 }
  0x5c   : > { %3726 = vmatmul.mubr.msk.f32.vlgmr.msra.gmra.mrb[0].mxu0 %vm528_vm0, %v4953_v0 }
  0x5d   : > { %3772 = vmatmul.mubr.msk.f32.vlgmr.msra.gmra.mrb[0].mxu1 %vm528_vm0, %v4953_v0  ;;  %4162 = vmatpush3.bf16.xpose.msk.msra.mxu0 %vm4966_vm1, %v4160_v51  ;;  %v4232_v51 = vpack.c.bf16 %v328_v45, %v327_v44 }
  0x5e   : > { %4210 = vmatpush3.bf16.xpose.msk.msra.mxu1 %vm4966_vm1, %v4208_v55  ;;  %3727 = vmatprep.mubr.msk.f32.mxu0 %vm528_vm0, %v5126_v56  ;;  %v298_v55 = vld [vmem:[%s4962_s7 + $0x258] sm:$0xff] }
  0x5f   : > { %3773 = vmatprep.mubr.msk.f32.mxu1 %vm528_vm0, %v5126_v56  ;;  %4165 = vmatprep.subr.msk.bf16.mxu0 %vm4966_vm1, %v4163_v57  ;;  %v329_v57 = vld [vmem:[%s4962_s7 + $0x350] sm:$0xff]  ;;  %v4190_v2 = vpack.c.bf16 %v298_v55, %v297_v54  ;;  %v4262_v54 = vpack.c.bf16 %v354_v47, %v353_v46  ;;  %v4310_v55 = vpack.c.bf16 %v386_v49, %v385_v48 }
  0x60   : > { %3728 = vmatmul.mubr.msk.f32.gmra.mrb[2].mxu0 %vm528_vm0, %v5126_v56  ;;  %4213 = vmatprep.subr.msk.bf16.mxu1 %vm4966_vm1, %v4211_v58  ;;  %v330_v58 = vld [vmem:[%s4962_s7 + $0x358] sm:$0xff] }
  0x61   : > { %3774 = vmatmul.mubr.msk.f32.gmra.mrb[2].mxu1 %vm528_vm0, %v5126_v56  ;;  %3729 = vmatprep.mubr.msk.f32.mxu0 %vm528_vm0, %v5138_v60  ;;  %v4238_v3 = vpack.c.bf16 %v330_v58, %v329_v57 }
  0x62   : > { %3775 = vmatprep.mubr.msk.f32.mxu1 %vm528_vm0, %v5138_v60 }
  0x64   : > { %3730 = vmatmul.mubr.msk.f32.gmra.mrb[4].mxu0 %vm528_vm0, %v5138_v60 }
  0x65   : > { %4168 = vmatpush3.bf16.xpose.msk.msra.mxu0 %vm4966_vm1, %v4166_v7  ;;  %3776 = vmatmul.mubr.msk.f32.gmra.mrb[4].mxu1 %vm528_vm0, %v5138_v60  ;;  %v300_v7 = vld [vmem:[%s4962_s7 + $0x268] sm:$0xff] }
  0x66   : > { %4216 = vmatpush3.bf16.xpose.msk.msra.mxu1 %vm4966_vm1, %v4214_v8  ;;  %4171 = vmatprep.subr.msk.bf16.mxu0 %vm4966_vm1, %v4169_v9  ;;  %v331_v8 = vld [vmem:[%s4962_s7 + $0x360] sm:$0xff]  ;;  %v332_v9 = vld [vmem:[%s4962_s7 + $0x368] sm:$0xff]  ;;  %v4196_v16 = vpack.c.bf16 %v300_v7, %v299_v6  ;;  %v4268_v6 = vpack.c.bf16 %v356_v61, %v355_v59  ;;  %v4316_v7 = vpack.c.bf16 %v388_v63, %v387_v62 }
  0x67   : > { %4219 = vmatprep.subr.msk.bf16.mxu1 %vm4966_vm1, %v4217_v11  ;;  %3731 = vmatprep.mubr.msk.f32.mxu0 %vm528_vm0, %v5176_v12  ;;  %v318_v11 = vld [vmem:[%s4962_s7 + $0x2f8] sm:$0xff]  ;;  %v4244_v17 = vpack.c.bf16 %v332_v9, %v331_v8 }
  0x68   : > { %3777 = vmatprep.mubr.msk.f32.mxu1 %vm528_vm0, %v5176_v12  ;;  %3732 = vmatmul.mubr.msk.f32.gmra.mrb[6].mxu0 %vm528_vm0, %v5176_v12  ;;  %v4199_v18 = vpack.c.bf16 %v318_v11, %v317_v10  ;;  %v357_v10 = vld [vmem:[%s4962_s7 + $0x430] sm:$0xff]  ;;  %v358_v11 = vld [vmem:[%s4962_s7 + $0x438] sm:$0xff] }
  0x69   : > { %3778 = vmatmul.mubr.msk.f32.gmra.mrb[6].mxu1 %vm528_vm0, %v5176_v12  ;;  %3733 = vmatprep.mubr.msk.f32.mxu0 %vm528_vm0, %v5186_v14  ;;  %v4274_v20 = vpack.c.bf16 %v358_v11, %v357_v10 }
  0x6a   : > { %3779 = vmatprep.mubr.msk.f32.mxu1 %vm528_vm0, %v5186_v14 }
  0x6c   : > { %3734 = vmatmul.mubr.msk.f32.gmra.mrb[8].mxu0 %vm528_vm0, %v5186_v14 }
  0x6d   : > { %4174 = vmatpush3.bf16.xpose.msk.msra.mxu0 %vm4966_vm1, %v4172_v23  ;;  %3780 = vmatmul.mubr.msk.f32.gmra.mrb[8].mxu1 %vm528_vm0, %v5186_v14  ;;  %v334_v23 = vld [vmem:[%s4962_s7 + $0x378] sm:$0xff] }
  0x6e   : > { %4222 = vmatpush3.bf16.xpose.msk.msra.mxu1 %vm4966_vm1, %v4220_v24  ;;  %4177 = vmatprep.subr.msk.bf16.mxu0 %vm4966_vm1, %v4175_v25  ;;  %v367_v24 = vld [vmem:[%s4962_s7 + $0x480] sm:$0xff]  ;;  %v368_v25 = vld [vmem:[%s4962_s7 + $0x488] sm:$0xff]  ;;  %v4250_v31 = vpack.c.bf16 %v334_v23, %v333_v22 }
  0x6f   : > { %4225 = vmatprep.subr.msk.bf16.mxu1 %vm4966_vm1, %v4223_v27  ;;  %3735 = vmatprep.mubr.msk.f32.mxu0 %vm528_vm0, %v5224_v28  ;;  %v400_v27 = vld [vmem:[%s4962_s7 + $0x588] sm:$0xff]  ;;  %v4253_v32 = vpack.c.bf16 %v368_v25, %v367_v24  ;;  %v359_v24 = vld [vmem:[%s4962_s7 + $0x440] sm:$0xff] }
  0x70   : > { %3781 = vmatprep.mubr.msk.f32.mxu1 %vm528_vm0, %v5224_v28  ;;  %3736 = vmatmul.mubr.msk.f32.gmra.mrb[10].mxu0 %vm528_vm0, %v5224_v28  ;;  %v4301_v33 = vpack.c.bf16 %v400_v27, %v399_v26  ;;  %v360_v25 = vld [vmem:[%s4962_s7 + $0x448] sm:$0xff]  ;;  %v391_v26 = vld [vmem:[%s4962_s7 + $0x540] sm:$0xff] }
  0x71   : > { %3782 = vmatmul.mubr.msk.f32.gmra.mrb[10].mxu1 %vm528_vm0, %v5224_v28  ;;  %3737 = vmatprep.mubr.msk.f32.mxu0 %vm528_vm0, %v5233_v29  ;;  %v392_v27 = vld [vmem:[%s4962_s7 + $0x548] sm:$0xff] }
  0x72   : > { %3783 = vmatprep.mubr.msk.f32.mxu1 %vm528_vm0, %v5233_v29 }
  0x74   : > { %3738 = vmatmul.mubr.msk.f32.gmra.mrb[12].mxu0 %vm528_vm0, %v5233_v29 }
  0x75   : > { %4180 = vmatpush3.bf16.xpose.msk.msra.mxu0 %vm4966_vm1, %v4178_v38  ;;  %3784 = vmatmul.mubr.msk.f32.gmra.mrb[12].mxu1 %vm528_vm0, %v5233_v29  ;;  %v369_v38 = vld [vmem:[%s4962_s7 + $0x490] sm:$0xff] }
  0x76   : > { %4228 = vmatpush3.bf16.xpose.msk.msra.mxu1 %vm4966_vm1, %v4226_v39  ;;  %4183 = vmatprep.subr.msk.bf16.mxu0 %vm4966_vm1, %v4181_v40  ;;  %v370_v39 = vld [vmem:[%s4962_s7 + $0x498] sm:$0xff]  ;;  %v4256_v40 = vpack.c.bf16 %v352_v35, %v351_v34  ;;  %v4280_v34 = vpack.c.bf16 %v360_v25, %v359_v24  ;;  %v4328_v35 = vpack.c.bf16 %v392_v27, %v391_v26 }
  0x77   : > { %4231 = vmatprep.subr.msk.bf16.mxu1 %vm4966_vm1, %v4229_v41  ;;  %3817 = vmatprep.mubr.msk.f32.mxu0 %vm528_vm0, %v4953_v0  ;;  %v401_v41 = vld [vmem:[%s4962_s7 + $0x590] sm:$0xff]  ;;  %v4259_v44 = vpack.c.bf16 %v370_v39, %v369_v38  ;;  %v362_v39 = vld [vmem:[%s4962_s7 + $0x458] sm:$0xff] }
  0x78   : > { %3863 = vmatprep.mubr.msk.f32.mxu1 %vm528_vm0, %v4953_v0  ;;  %v4307_v45 = vpack.c.bf16 %v402_v42, %v401_v41  ;;  %v361_v38 = vld [vmem:[%s4962_s7 + $0x450] sm:$0xff]  ;;  %v394_v41 = vld [vmem:[%s4962_s7 + $0x558] sm:$0xff]  ;;  %v379_v42 = vld [vmem:[%s4962_s7 + $0x4e0] sm:$0xff] }
  0x79   : > { %v4286_v46 = vpack.c.bf16 %v362_v39, %v361_v38  ;;  %v466_v24 = vld [vmem:[%s4962_s7 + $0x798] sm:$0xff] }
  0x7d   : > { %4186 = vmatpush3.bf16.xpose.msk.msra.mxu0 %vm4966_vm1, %v4184_v50  ;;  %v371_v50 = vld [vmem:[%s4962_s7 + $0x4a0] sm:$0xff] }
  0x7e   : > { %4234 = vmatpush3.bf16.xpose.msk.msra.mxu1 %vm4966_vm1, %v4232_v51  ;;  %4189 = vmatprep.subr.msk.bf16.mxu0 %vm4966_vm1, %v4187_v52  ;;  %v372_v51 = vld [vmem:[%s4962_s7 + $0x4a8] sm:$0xff]  ;;  %v403_v52 = vld [vmem:[%s4962_s7 + $0x5a0] sm:$0xff] }
  0x7f   : > { %4237 = vmatprep.subr.msk.bf16.mxu1 %vm4966_vm1, %v4235_v53  ;;  %v404_v53 = vld [vmem:[%s4962_s7 + $0x5a8] sm:$0xff]  ;;  %v4265_v57 = vpack.c.bf16 %v372_v51, %v371_v50  ;;  %v363_v50 = vld [vmem:[%s4962_s7 + $0x460] sm:$0xff] }
  0x80   : > { %v4313_v58 = vpack.c.bf16 %v404_v53, %v403_v52  ;;  %v364_v51 = vld [vmem:[%s4962_s7 + $0x468] sm:$0xff]  ;;  %v395_v52 = vld [vmem:[%s4962_s7 + $0x560] sm:$0xff] }
  0x81   : > { %v396_v53 = vld [vmem:[%s4962_s7 + $0x568] sm:$0xff]  ;;  %v4292_v59 = vpack.c.bf16 %v364_v51, %v363_v50 }
  0x82   : > { %v4340_v61 = vpack.c.bf16 %v396_v53, %v395_v52  ;;  %v421_v53 = vld [vmem:[%s4962_s7 + $0x630] sm:$0xff] }
  0x85   : > { %4192 = vmatpush3.bf16.xpose.msk.msra.mxu0 %vm4966_vm1, %v4190_v2  ;;  %v373_v2 = vld [vmem:[%s4962_s7 + $0x4b0] sm:$0xff] }
  0x86   : > { %4240 = vmatpush3.bf16.xpose.msk.msra.mxu1 %vm4966_vm1, %v4238_v3  ;;  %4195 = vmatprep.subr.msk.bf16.mxu0 %vm4966_vm1, %v4193_v4  ;;  %v374_v3 = vld [vmem:[%s4962_s7 + $0x4b8] sm:$0xff]  ;;  %v405_v4 = vld [vmem:[%s4962_s7 + $0x5b0] sm:$0xff] }
  0x87   : > { %4243 = vmatprep.subr.msk.bf16.mxu1 %vm4966_vm1, %v4241_v5  ;;  %v406_v5 = vld [vmem:[%s4962_s7 + $0x5b8] sm:$0xff]  ;;  %v4271_v8 = vpack.c.bf16 %v374_v3, %v373_v2  ;;  %v365_v2 = vld [vmem:[%s4962_s7 + $0x470] sm:$0xff] }
  0x88   : > { %v4319_v9 = vpack.c.bf16 %v406_v5, %v405_v4  ;;  %v366_v3 = vld [vmem:[%s4962_s7 + $0x478] sm:$0xff]  ;;  %v397_v4 = vld [vmem:[%s4962_s7 + $0x570] sm:$0xff] }
  0x89   : > { %v398_v5 = vld [vmem:[%s4962_s7 + $0x578] sm:$0xff]  ;;  %v4298_v10 = vpack.c.bf16 %v366_v3, %v365_v2 }
  0x8a   : > { %v4346_v11 = vpack.c.bf16 %v398_v5, %v397_v4  ;;  %v423_v5 = vld [vmem:[%s4962_s7 + $0x640] sm:$0xff] }
  0x8d   : > { %4198 = vmatpush3.bf16.xpose.msk.msra.mxu0 %vm4966_vm1, %v4196_v16  ;;  %v375_v16 = vld [vmem:[%s4962_s7 + $0x4c0] sm:$0xff] }
  0x8e   : > { %4246 = vmatpush3.bf16.xpose.msk.msra.mxu1 %vm4966_vm1, %v4244_v17  ;;  %4201 = vmatprep.subr.msk.bf16.mxu0 %vm4966_vm1, %v4199_v18  ;;  %v376_v17 = vld [vmem:[%s4962_s7 + $0x4c8] sm:$0xff]  ;;  %v407_v18 = vld [vmem:[%s4962_s7 + $0x5c0] sm:$0xff] }
  0x8f   : > { %4249 = vmatprep.subr.msk.bf16.mxu1 %vm4966_vm1, %v4247_v19  ;;  %v408_v19 = vld [vmem:[%s4962_s7 + $0x5c8] sm:$0xff]  ;;  %v4277_v22 = vpack.c.bf16 %v376_v17, %v375_v16  ;;  %v415_v16 = vld [vmem:[%s4962_s7 + $0x600] sm:$0xff] }
  0x90   : > { %v4325_v23 = vpack.c.bf16 %v408_v19, %v407_v18  ;;  %v416_v17 = vld [vmem:[%s4962_s7 + $0x608] sm:$0xff]  ;;  %v447_v18 = vld [vmem:[%s4962_s7 + $0x700] sm:$0xff] }
  0x91   : > { %v448_v19 = vld [vmem:[%s4962_s7 + $0x708] sm:$0xff] }
  0x92   : > { %v4400_v25 = vpack.c.bf16 %v448_v19, %v447_v18 }
  0x95   : > { %4204 = vmatpush3.bf16.xpose.msk.msra.mxu0 %vm4966_vm1, %v4202_v30  ;;  %v377_v30 = vld [vmem:[%s4962_s7 + $0x4d0] sm:$0xff] }
  0x96   : > { %4252 = vmatpush3.bf16.xpose.msk.msra.mxu1 %vm4966_vm1, %v4250_v31  ;;  %4255 = vmatprep.subr.msk.bf16.mxu0 %vm4966_vm1, %v4253_v32  ;;  %v378_v31 = vld [vmem:[%s4962_s7 + $0x4d8] sm:$0xff]  ;;  %v409_v32 = vld [vmem:[%s4962_s7 + $0x5d0] sm:$0xff] }
  0x97   : > { %4303 = vmatprep.subr.msk.bf16.mxu1 %vm4966_vm1, %v4301_v33  ;;  %v410_v33 = vld [vmem:[%s4962_s7 + $0x5d8] sm:$0xff]  ;;  %v4283_v36 = vpack.c.bf16 %v378_v31, %v377_v30  ;;  %v417_v30 = vld [vmem:[%s4962_s7 + $0x610] sm:$0xff] }
  0x98   : > { %v4331_v37 = vpack.c.bf16 %v410_v33, %v409_v32  ;;  %v418_v31 = vld [vmem:[%s4962_s7 + $0x618] sm:$0xff]  ;;  %v435_v33 = vld [vmem:[%s4962_s7 + $0x6a0] sm:$0xff] }
  0x99   : > { %v450_v32 = vld [vmem:[%s4962_s7 + $0x718] sm:$0xff] }
  0x9c   : > { %3818 = vmatmul.mubr.msk.f32.vlgmr.msra.gmra.mrb[14].mxu0 %vm528_vm0, %v4953_v0 }
  0x9d   : > { %3864 = vmatmul.mubr.msk.f32.vlgmr.msra.gmra.mrb[14].mxu1 %vm528_vm0, %v4953_v0  ;;  %4258 = vmatpush3.bf16.xpose.msk.msra.mxu0 %vm4966_vm1, %v4256_v40  ;;  %v393_v40 = vld [vmem:[%s4962_s7 + $0x550] sm:$0xff] }
  0x9e   : > { %4306 = vmatpush3.bf16.xpose.msk.msra.mxu1 %vm4966_vm1, %v4304_v43  ;;  %3819 = vmatprep.mubr.msk.f32.mxu0 %vm528_vm0, %v5126_v56  ;;  %v380_v43 = vld [vmem:[%s4962_s7 + $0x4e8] sm:$0xff]  ;;  %v4334_v47 = vpack.c.bf16 %v394_v41, %v393_v40  ;;  %v419_v41 = vld [vmem:[%s4962_s7 + $0x620] sm:$0xff] }
  0x9f   : > { %3865 = vmatprep.mubr.msk.f32.mxu1 %vm528_vm0, %v5126_v56  ;;  %4261 = vmatprep.subr.msk.bf16.mxu0 %vm4966_vm1, %v4259_v44  ;;  %v411_v44 = vld [vmem:[%s4962_s7 + $0x5e0] sm:$0xff]  ;;  %v4289_v48 = vpack.c.bf16 %v380_v43, %v379_v42  ;;  %v420_v42 = vld [vmem:[%s4962_s7 + $0x628] sm:$0xff] }
  0xa0   : > { %3820 = vmatmul.mubr.msk.f32.gmra.mrb[16].mxu0 %vm528_vm0, %v5126_v56  ;;  %4309 = vmatprep.subr.msk.bf16.mxu1 %vm4966_vm1, %v4307_v45  ;;  %v412_v45 = vld [vmem:[%s4962_s7 + $0x5e8] sm:$0xff]  ;;  %v451_v43 = vld [vmem:[%s4962_s7 + $0x720] sm:$0xff] }
  0xa1   : > { %3866 = vmatmul.mubr.msk.f32.gmra.mrb[16].mxu1 %vm528_vm0, %v5126_v56  ;;  %3821 = vmatprep.mubr.msk.f32.mxu0 %vm528_vm0, %v5138_v60  ;;  %v4337_v49 = vpack.c.bf16 %v412_v45, %v411_v44  ;;  %v452_v44 = vld [vmem:[%s4962_s7 + $0x728] sm:$0xff]  ;;  %v437_v45 = vld [vmem:[%s4962_s7 + $0x6b0] sm:$0xff] }
  0xa2   : > { %3867 = vmatprep.mubr.msk.f32.mxu1 %vm528_vm0, %v5138_v60  ;;  %v4412_v50 = vpack.c.bf16 %v452_v44, %v451_v43 }
  0xa4   : > { %3822 = vmatmul.mubr.msk.f32.gmra.mrb[18].mxu0 %vm528_vm0, %v5138_v60 }
  0xa5   : > { %4264 = vmatpush3.bf16.xpose.msk.msra.mxu0 %vm4966_vm1, %v4262_v54  ;;  %3868 = vmatmul.mubr.msk.f32.gmra.mrb[18].mxu1 %vm528_vm0, %v5138_v60  ;;  %v381_v54 = vld [vmem:[%s4962_s7 + $0x4f0] sm:$0xff] }
  0xa6   : > { %4312 = vmatpush3.bf16.xpose.msk.msra.mxu1 %vm4966_vm1, %v4310_v55  ;;  %4267 = vmatprep.subr.msk.bf16.mxu0 %vm4966_vm1, %v4265_v57  ;;  %v382_v55 = vld [vmem:[%s4962_s7 + $0x4f8] sm:$0xff]  ;;  %v413_v57 = vld [vmem:[%s4962_s7 + $0x5f0] sm:$0xff] }
  0xa7   : > { %4315 = vmatprep.subr.msk.bf16.mxu1 %vm4966_vm1, %v4313_v58  ;;  %3823 = vmatprep.mubr.msk.f32.mxu0 %vm528_vm0, %v5176_v12  ;;  %v414_v58 = vld [vmem:[%s4962_s7 + $0x5f8] sm:$0xff]  ;;  %v4295_v62 = vpack.c.bf16 %v382_v55, %v381_v54  ;;  %v453_v55 = vld [vmem:[%s4962_s7 + $0x730] sm:$0xff] }
  0xa8   : > { %3869 = vmatprep.mubr.msk.f32.mxu1 %vm528_vm0, %v5176_v12  ;;  %3824 = vmatmul.mubr.msk.f32.gmra.mrb[20].mxu0 %vm528_vm0, %v5176_v12  ;;  %v4343_v63 = vpack.c.bf16 %v414_v58, %v413_v57  ;;  %v422_v54 = vld [vmem:[%s4962_s7 + $0x638] sm:$0xff]  ;;  %v439_v58 = vld [vmem:[%s4962_s7 + $0x6c0] sm:$0xff] }
  0xa9   : > { %3870 = vmatmul.mubr.msk.f32.gmra.mrb[20].mxu1 %vm528_vm0, %v5176_v12  ;;  %3825 = vmatprep.mubr.msk.f32.mxu0 %vm528_vm0, %v5186_v14  ;;  %v454_v57 = vld [vmem:[%s4962_s7 + $0x738] sm:$0xff] }
  0xaa   : > { %3871 = vmatprep.mubr.msk.f32.mxu1 %vm528_vm0, %v5186_v14  ;;  %v4418_v2 = vpack.c.bf16 %v454_v57, %v453_v55 }
  0xac   : > { %3826 = vmatmul.mubr.msk.f32.gmra.mrb[22].mxu0 %vm528_vm0, %v5186_v14  ;;  %v5732_v1 = vpop.permute.xlu0 %495 }
  0xad   : > { %4270 = vmatpush3.bf16.xpose.msk.msra.mxu0 %vm4966_vm1, %v4268_v6  ;;  %3872 = vmatmul.mubr.msk.f32.gmra.mrb[22].mxu1 %vm528_vm0, %v5186_v14  ;;  %v431_v6 = vld [vmem:[%s4962_s7 + $0x680] sm:$0xff] }
  0xae   : > { %4318 = vmatpush3.bf16.xpose.msk.msra.mxu1 %vm4966_vm1, %v4316_v7  ;;  %4273 = vmatprep.subr.msk.bf16.mxu0 %vm4966_vm1, %v4271_v8  ;;  %v432_v7 = vld [vmem:[%s4962_s7 + $0x688] sm:$0xff]  ;;  %v463_v8 = vld [vmem:[%s4962_s7 + $0x780] sm:$0xff] }
  0xaf   : > { %4321 = vmatprep.subr.msk.bf16.mxu1 %vm4966_vm1, %v4319_v9  ;;  %3827 = vmatprep.mubr.msk.f32.mxu0 %vm528_vm0, %v5224_v28  ;;  %v464_v9 = vld [vmem:[%s4962_s7 + $0x788] sm:$0xff]  ;;  %v4349_v13 = vpack.c.bf16 %v432_v7, %v431_v6  ;;  %v455_v7 = vld [vmem:[%s4962_s7 + $0x740] sm:$0xff] }
  0xb0   : > { %3873 = vmatprep.mubr.msk.f32.mxu1 %vm528_vm0, %v5224_v28  ;;  %3828 = vmatmul.mubr.msk.f32.gmra.mrb[24].mxu0 %vm528_vm0, %v5224_v28  ;;  %v4397_v15 = vpack.c.bf16 %v464_v9, %v463_v8  ;;  %v424_v6 = vld [vmem:[%s4962_s7 + $0x648] sm:$0xff]  ;;  %v441_v9 = vld [vmem:[%s4962_s7 + $0x6d0] sm:$0xff] }
  0xb1   : > { %3874 = vmatmul.mubr.msk.f32.gmra.mrb[24].mxu1 %vm528_vm0, %v5224_v28  ;;  %3829 = vmatprep.mubr.msk.f32.mxu0 %vm528_vm0, %v5233_v29  ;;  %v456_v8 = vld [vmem:[%s4962_s7 + $0x748] sm:$0xff] }
  0xb2   : > { %3875 = vmatprep.mubr.msk.f32.mxu1 %vm528_vm0, %v5233_v29 }
  0xb4   : > { %3830 = vmatmul.mubr.msk.f32.gmra.mrb[26].mxu0 %vm528_vm0, %v5233_v29 }
  0xb5   : > { %4276 = vmatpush3.bf16.xpose.msk.msra.mxu0 %vm4966_vm1, %v4274_v20  ;;  %3876 = vmatmul.mubr.msk.f32.gmra.mrb[26].mxu1 %vm528_vm0, %v5233_v29  ;;  %v433_v20 = vld [vmem:[%s4962_s7 + $0x690] sm:$0xff] }
  0xb6   : > { %4324 = vmatpush3.bf16.xpose.msk.msra.mxu1 %vm4966_vm1, %v4322_v21  ;;  %4279 = vmatprep.subr.msk.bf16.mxu0 %vm4966_vm1, %v4277_v22  ;;  %v434_v21 = vld [vmem:[%s4962_s7 + $0x698] sm:$0xff]  ;;  %v4352_v22 = vpack.c.bf16 %v416_v17, %v415_v16  ;;  %v4376_v16 = vpack.c.bf16 %v424_v6, %v423_v5  ;;  %v4424_v17 = vpack.c.bf16 %v456_v8, %v455_v7  ;;  %v4874_v7 = vmov 0.0  }
  0xb7   : > { %4327 = vmatprep.subr.msk.bf16.mxu1 %vm4966_vm1, %v4325_v23  ;;  %3909 = vmatprep.mubr.msk.f32.mxu0 %vm528_vm0, %v4953_v0  ;;  %v465_v23 = vld [vmem:[%s4962_s7 + $0x790] sm:$0xff]  ;;  %v4355_v26 = vpack.c.bf16 %v434_v21, %v433_v20  ;;  %v426_v21 = vld [vmem:[%s4962_s7 + $0x658] sm:$0xff] }
  0xb8   : > { %3955 = vmatprep.mubr.msk.f32.mxu1 %vm528_vm0, %v4953_v0  ;;  %v4403_v27 = vpack.c.bf16 %v466_v24, %v465_v23  ;;  %v425_v20 = vld [vmem:[%s4962_s7 + $0x650] sm:$0xff]  ;;  %v458_v23 = vld [vmem:[%s4962_s7 + $0x758] sm:$0xff]  ;;  %v443_v24 = vld [vmem:[%s4962_s7 + $0x6e0] sm:$0xff] }
  0xbd   : > { %4282 = vmatpush3.bf16.xpose.msk.msra.mxu0 %vm4966_vm1, %v4280_v34  ;;  %v436_v34 = vld [vmem:[%s4962_s7 + $0x6a8] sm:$0xff] }
  0xbe   : > { %4330 = vmatpush3.bf16.xpose.msk.msra.mxu1 %vm4966_vm1, %v4328_v35  ;;  %4285 = vmatprep.subr.msk.bf16.mxu0 %vm4966_vm1, %v4283_v36  ;;  %v4358_v35 = vpack.c.bf16 %v418_v31, %v417_v30  ;;  %v467_v36 = vld [vmem:[%s4962_s7 + $0x7a0] sm:$0xff]  ;;  %v4361_v39 = vpack.c.bf16 %v436_v34, %v435_v33  ;;  %v4382_v30 = vpack.c.bf16 %v426_v21, %v425_v20  ;;  %v428_v34 = vld [vmem:[%s4962_s7 + $0x668] sm:$0xff] }
  0xbf   : > { %4333 = vmatprep.subr.msk.bf16.mxu1 %vm4966_vm1, %v4331_v37  ;;  %v468_v37 = vld [vmem:[%s4962_s7 + $0x7a8] sm:$0xff]  ;;  %v427_v33 = vld [vmem:[%s4962_s7 + $0x660] sm:$0xff] }
  0xc0   : > { %v4409_v40 = vpack.c.bf16 %v468_v37, %v467_v36  ;;  %v460_v36 = vld [vmem:[%s4962_s7 + $0x768] sm:$0xff]  ;;  %v445_v37 = vld [vmem:[%s4962_s7 + $0x6f0] sm:$0xff] }
  0xc5   : > { %4288 = vmatpush3.bf16.xpose.msk.msra.mxu0 %vm4966_vm1, %v4286_v46  ;;  %v438_v46 = vld [vmem:[%s4962_s7 + $0x6b8] sm:$0xff] }
  0xc6   : > { %4336 = vmatpush3.bf16.xpose.msk.msra.mxu1 %vm4966_vm1, %v4334_v47  ;;  %4291 = vmatprep.subr.msk.bf16.mxu0 %vm4966_vm1, %v4289_v48  ;;  %v4364_v47 = vpack.c.bf16 %v420_v42, %v419_v41  ;;  %v469_v48 = vld [vmem:[%s4962_s7 + $0x7b0] sm:$0xff]  ;;  %v4367_v51 = vpack.c.bf16 %v438_v46, %v437_v45  ;;  %v4388_v41 = vpack.c.bf16 %v428_v34, %v427_v33  ;;  %v430_v46 = vld [vmem:[%s4962_s7 + $0x678] sm:$0xff] }
  0xc7   : > { %4339 = vmatprep.subr.msk.bf16.mxu1 %vm4966_vm1, %v4337_v49  ;;  %v470_v49 = vld [vmem:[%s4962_s7 + $0x7b8] sm:$0xff]  ;;  %v429_v45 = vld [vmem:[%s4962_s7 + $0x670] sm:$0xff] }
  0xc8   : > { %v4415_v52 = vpack.c.bf16 %v470_v49, %v469_v48  ;;  %v462_v48 = vld [vmem:[%s4962_s7 + $0x778] sm:$0xff]  ;;  %v4394_v49 = vpack.c.bf16 %v430_v46, %v429_v45 }
  0xcd   : > { %4294 = vmatpush3.bf16.xpose.msk.msra.mxu0 %vm4966_vm1, %v4292_v59  ;;  %v440_v59 = vld [vmem:[%s4962_s7 + $0x6c8] sm:$0xff] }
  0xce   : > { %4342 = vmatpush3.bf16.xpose.msk.msra.mxu1 %vm4966_vm1, %v4340_v61  ;;  %4297 = vmatprep.subr.msk.bf16.mxu0 %vm4966_vm1, %v4295_v62  ;;  %v471_v61 = vld [vmem:[%s4962_s7 + $0x7c0] sm:$0xff]  ;;  %v472_v62 = vld [vmem:[%s4962_s7 + $0x7c8] sm:$0xff]  ;;  %v4373_v3 = vpack.c.bf16 %v440_v59, %v439_v58 }
  0xcf   : > { %4345 = vmatprep.subr.msk.bf16.mxu1 %vm4966_vm1, %v4343_v63  ;;  %v4370_v63 = vpack.c.bf16 %v422_v54, %v421_v53  ;;  %v4421_v4 = vpack.c.bf16 %v472_v62, %v471_v61  ;;  %v5756_v62 = vpop.permute.xlu1 %505 }
  0xd3   : > { %v5771_v21 = vpop.permute.xlu1 %510 }
  0xd5   : > { %4300 = vmatpush3.bf16.xpose.msk.msra.mxu0 %vm4966_vm1, %v4298_v10  ;;  %v442_v10 = vld [vmem:[%s4962_s7 + $0x6d8] sm:$0xff] }
  0xd6   : > { %4348 = vmatpush3.bf16.xpose.msk.msra.mxu1 %vm4966_vm1, %v4346_v11  ;;  %4351 = vmatprep.subr.msk.bf16.mxu0 %vm4966_vm1, %v4349_v13  ;;  %v4807_v11 = vld [vmem:[%s6075_s1] sm:$0xff]  ;;  %v473_v13 = vld [vmem:[%s4962_s7 + $0x7d0] sm:$0xff]  ;;  %v4379_v18 = vpack.c.bf16 %v442_v10, %v441_v9 }
  0xd7   : > { %4399 = vmatprep.subr.msk.bf16.mxu1 %vm4966_vm1, %v4397_v15  ;;  %v474_v15 = vld [vmem:[%s4962_s7 + $0x7d8] sm:$0xff] }
  0xd8   : > { %v4427_v19 = vpack.c.bf16 %v474_v15, %v473_v13 }
  0xdc   : > { %3910 = vmatmul.mubr.msk.f32.vlgmr.msra.gmra.mrb[28].mxu0 %vm528_vm0, %v4953_v0 }
  0xdd   : > { %3956 = vmatmul.mubr.msk.f32.vlgmr.msra.gmra.mrb[28].mxu1 %vm528_vm0, %v4953_v0  ;;  %4354 = vmatpush3.bf16.xpose.msk.msra.mxu0 %vm4966_vm1, %v4352_v22  ;;  %v449_v0 = vld [vmem:[%s4962_s7 + $0x710] sm:$0xff] }
  0xde   : > { %4402 = vmatpush3.bf16.xpose.msk.msra.mxu1 %vm4966_vm1, %v4400_v25  ;;  %3911 = vmatprep.mubr.msk.f32.mxu0 %vm528_vm0, %v5126_v56  ;;  %v4406_v38 = vpack.c.bf16 %v450_v32, %v449_v0  ;;  %v457_v22 = vld [vmem:[%s4962_s7 + $0x750] sm:$0xff]  ;;  %v444_v25 = vld [vmem:[%s4962_s7 + $0x6e8] sm:$0xff] }
  0xdf   : > { %3957 = vmatprep.mubr.msk.f32.mxu1 %vm528_vm0, %v5126_v56  ;;  %4357 = vmatprep.subr.msk.bf16.mxu0 %vm4966_vm1, %v4355_v26  ;;  %v475_v26 = vld [vmem:[%s4962_s7 + $0x7e0] sm:$0xff]  ;;  %v4430_v31 = vpack.c.bf16 %v458_v23, %v457_v22  ;;  %v4385_v0 = vpack.c.bf16 %v444_v25, %v443_v24 }
  0xe0   : > { %3912 = vmatmul.mubr.msk.f32.gmra.mrb[30].mxu0 %vm528_vm0, %v5126_v56  ;;  %4405 = vmatprep.subr.msk.bf16.mxu1 %vm4966_vm1, %v4403_v27  ;;  %v476_v27 = vld [vmem:[%s4962_s7 + $0x7e8] sm:$0xff] }
  0xe1   : > { %3958 = vmatmul.mubr.msk.f32.gmra.mrb[30].mxu1 %vm528_vm0, %v5126_v56  ;;  %3913 = vmatprep.mubr.msk.f32.mxu0 %vm528_vm0, %v5138_v60  ;;  %v4433_v32 = vpack.c.bf16 %v476_v27, %v475_v26 }
  0xe2   : > { %3959 = vmatprep.mubr.msk.f32.mxu1 %vm528_vm0, %v5138_v60 }
  0xe4   : > { %3914 = vmatmul.mubr.msk.f32.gmra.mrb[32].mxu0 %vm528_vm0, %v5138_v60 }
  0xe5   : > { %3960 = vmatmul.mubr.msk.f32.gmra.mrb[32].mxu1 %vm528_vm0, %v5138_v60  ;;  %4360 = vmatpush3.bf16.xpose.msk.msra.mxu0 %vm4966_vm1, %v4358_v35  ;;  %v459_v35 = vld [vmem:[%s4962_s7 + $0x760] sm:$0xff] }
  0xe6   : > { %4408 = vmatpush3.bf16.xpose.msk.msra.mxu1 %vm4966_vm1, %v4406_v38  ;;  %3915 = vmatprep.mubr.msk.f32.mxu0 %vm528_vm0, %v5176_v12  ;;  %v446_v38 = vld [vmem:[%s4962_s7 + $0x6f8] sm:$0xff]  ;;  %v4436_v42 = vpack.c.bf16 %v460_v36, %v459_v35 }
  0xe7   : > { %3961 = vmatprep.mubr.msk.f32.mxu1 %vm528_vm0, %v5176_v12  ;;  %4363 = vmatprep.subr.msk.bf16.mxu0 %vm4966_vm1, %v4361_v39  ;;  %v477_v39 = vld [vmem:[%s4962_s7 + $0x7f0] sm:$0xff]  ;;  %v4391_v43 = vpack.c.bf16 %v446_v38, %v445_v37 }
  0xe8   : > { %3916 = vmatmul.mubr.msk.f32.gmra.mrb[34].mxu0 %vm528_vm0, %v5176_v12  ;;  %4411 = vmatprep.subr.msk.bf16.mxu1 %vm4966_vm1, %v4409_v40  ;;  %v478_v40 = vld [vmem:[%s4962_s7 + $0x7f8] sm:$0xff] }
  0xe9   : > { %3962 = vmatmul.mubr.msk.f32.gmra.mrb[34].mxu1 %vm528_vm0, %v5176_v12  ;;  %3917 = vmatprep.mubr.msk.f32.mxu0 %vm528_vm0, %v5186_v14  ;;  %v4439_v44 = vpack.c.bf16 %v478_v40, %v477_v39 }
  0xea   : > { %3963 = vmatprep.mubr.msk.f32.mxu1 %vm528_vm0, %v5186_v14 }
  0xec   : > { %3918 = vmatmul.mubr.msk.f32.gmra.mrb[36].mxu0 %vm528_vm0, %v5186_v14 }
  0xed   : > { %3964 = vmatmul.mubr.msk.f32.gmra.mrb[36].mxu1 %vm528_vm0, %v5186_v14  ;;  %4366 = vmatpush3.bf16.xpose.msk.msra.mxu0 %vm4966_vm1, %v4364_v47  ;;  %v461_v47 = vld [vmem:[%s4962_s7 + $0x770] sm:$0xff] }
  0xee   : > { %4414 = vmatpush3.bf16.xpose.msk.msra.mxu1 %vm4966_vm1, %v4412_v50  ;;  %3919 = vmatprep.mubr.msk.f32.mxu0 %vm528_vm0, %v5224_v28  ;;  %v4442_v50 = vpack.c.bf16 %v462_v48, %v461_v47 }
  0xef   : > { %3965 = vmatprep.mubr.msk.f32.mxu1 %vm528_vm0, %v5224_v28  ;;  %4369 = vmatprep.subr.msk.bf16.mxu0 %vm4966_vm1, %v4367_v51 }
  0xf0   : > { %3920 = vmatmul.mubr.msk.f32.gmra.mrb[38].mxu0 %vm528_vm0, %v5224_v28  ;;  %4417 = vmatprep.subr.msk.bf16.mxu1 %vm4966_vm1, %v4415_v52 }
  0xf1   : > { %3966 = vmatmul.mubr.msk.f32.gmra.mrb[38].mxu1 %vm528_vm0, %v5224_v28  ;;  %3921 = vmatprep.mubr.msk.f32.mxu0 %vm528_vm0, %v5233_v29 }
  0xf2   : > { %3967 = vmatprep.mubr.msk.f32.mxu1 %vm528_vm0, %v5233_v29 }
  0xf4   : > { %3922 = vmatmul.mubr.msk.f32.gmra.mrb[40].mxu0 %vm528_vm0, %v5233_v29 }
  0xf5   : > { %3968 = vmatmul.mubr.msk.f32.gmra.mrb[40].mxu1 %vm528_vm0, %v5233_v29  ;;  %4372 = vmatpush3.bf16.xpose.msk.msra.mxu0 %vm4966_vm1, %v4370_v63 }
  0xf6   : > { %4420 = vmatpush3.bf16.xpose.msk.msra.mxu1 %vm4966_vm1, %v4418_v2  ;;  %4375 = vmatprep.subr.msk.bf16.mxu0 %vm4966_vm1, %v4373_v3 }
  0xf7   : > { %4423 = vmatprep.subr.msk.bf16.mxu1 %vm4966_vm1, %v4421_v4  ;;  %4001 = vmatprep.mubr.msk.f32.mxu0 %vm528_vm0, %v4807_v11 }
  0xf8   : > { %4047 = vmatprep.mubr.msk.f32.mxu1 %vm528_vm0, %v4807_v11 }
  0xfd   : > { %4378 = vmatpush3.bf16.xpose.msk.msra.mxu0 %vm4966_vm1, %v4376_v16 }
  0xfe   : > { %4426 = vmatpush3.bf16.xpose.msk.msra.mxu1 %vm4966_vm1, %v4424_v17  ;;  %4381 = vmatprep.subr.msk.bf16.mxu0 %vm4966_vm1, %v4379_v18 }
  0xff   : > { %4429 = vmatprep.subr.msk.bf16.mxu1 %vm4966_vm1, %v4427_v19 }
 0x105   : > { %4384 = vmatpush3.bf16.xpose.msk.msra.mxu0 %vm4966_vm1, %v4382_v30 }
 0x106   : > { %4432 = vmatpush3.bf16.xpose.msk.msra.mxu1 %vm4966_vm1, %v4430_v31  ;;  %4387 = vmatprep.subr.msk.bf16.mxu0 %vm4966_vm1, %v4385_v0 }
 0x107   : > { %4435 = vmatprep.subr.msk.bf16.mxu1 %vm4966_vm1, %v4433_v32 }
 0x10d   : > { %4390 = vmatpush3.bf16.xpose.msk.msra.mxu0 %vm4966_vm1, %v4388_v41 }
 0x10e   : > { %4438 = vmatpush3.bf16.xpose.msk.msra.mxu1 %vm4966_vm1, %v4436_v42  ;;  %4393 = vmatprep.subr.msk.bf16.mxu0 %vm4966_vm1, %v4391_v43 }
 0x10f   : > { %4441 = vmatprep.subr.msk.bf16.mxu1 %vm4966_vm1, %v4439_v44 }
 0x115   : > { %4396 = vmatpush3.bf16.xpose.msk.msra.mxu0 %vm4966_vm1, %v4394_v49 }
 0x116   : > { %4444 = vmatpush3.bf16.xpose.msk.msra.mxu1 %vm4966_vm1, %v4442_v50 }
 0x11c   : > { %4002 = vmatmul.mubr.msk.f32.vlgmr.msra.gmra.mrb[42].mxu0 %vm528_vm0, %v4807_v11 }
 0x11d   : > { %4048 = vmatmul.mubr.msk.f32.vlgmr.msra.gmra.mrb[42].mxu1 %vm528_vm0, %v4807_v11  ;;  %4003 = vmatprep.mubr.msk.f32.mxu0 %vm528_vm0, %v5126_v56 }
 0x11e   : > { %4049 = vmatprep.mubr.msk.f32.mxu1 %vm528_vm0, %v5126_v56 }
 0x120   : > { %4004 = vmatmul.mubr.msk.f32.gmra.mrb[44].mxu0 %vm528_vm0, %v5126_v56 }
 0x121   : > { %4050 = vmatmul.mubr.msk.f32.gmra.mrb[44].mxu1 %vm528_vm0, %v5126_v56  ;;  %4005 = vmatprep.mubr.msk.f32.mxu0 %vm528_vm0, %v5138_v60 }
 0x122   : > { %4051 = vmatprep.mubr.msk.f32.mxu1 %vm528_vm0, %v5138_v60 }
 0x124   : > { %4006 = vmatmul.mubr.msk.f32.gmra.mrb[46].mxu0 %vm528_vm0, %v5138_v60 }
 0x125   : > { %4052 = vmatmul.mubr.msk.f32.gmra.mrb[46].mxu1 %vm528_vm0, %v5138_v60  ;;  %4007 = vmatprep.mubr.msk.f32.mxu0 %vm528_vm0, %v5176_v12 }
 0x126   : > { %4053 = vmatprep.mubr.msk.f32.mxu1 %vm528_vm0, %v5176_v12 }
 0x128   : > { %4008 = vmatmul.mubr.msk.f32.gmra.mrb[48].mxu0 %vm528_vm0, %v5176_v12 }
 0x129   : > { %4054 = vmatmul.mubr.msk.f32.gmra.mrb[48].mxu1 %vm528_vm0, %v5176_v12  ;;  %4009 = vmatprep.mubr.msk.f32.mxu0 %vm528_vm0, %v5186_v14 }
 0x12a   : > { %4055 = vmatprep.mubr.msk.f32.mxu1 %vm528_vm0, %v5186_v14 }
 0x12c   : > { %4010 = vmatmul.mubr.msk.f32.gmra.mrb[50].mxu0 %vm528_vm0, %v5186_v14 }
 0x12d   : > { %4056 = vmatmul.mubr.msk.f32.gmra.mrb[50].mxu1 %vm528_vm0, %v5186_v14  ;;  %4011 = vmatprep.mubr.msk.f32.mxu0 %vm528_vm0, %v5224_v28  ;;  %v5749_v14 = vpop.permute.xlu0 %500 }
 0x12e   : > { %4057 = vmatprep.mubr.msk.f32.mxu1 %vm528_vm0, %v5224_v28 }
 0x12f   : > { %v1384_v56 = vpop.f32.mrb[0].mxu0 }
 0x130   : > { %v1385_v60 = vadd.f32 %v1384_v56, %v5732_v1  ;;  %v1491_v12 = vpop.f32.mrb[0].mxu1  ;;  %v1386_v51 = vpop.f32.mrb[1].mxu0  ;;  %4012 = vmatmul.mubr.msk.f32.gmra.mrb[52].mxu0 %vm528_vm0, %v5224_v28 }
 0x131   : > { %v1492_v52 = vadd.f32 %v1491_v12, %v5732_v1  ;;  %v1387_v53 = vadd.f32 %v1386_v51, %v5732_v1  ;;  %v1493_v54 = vpop.f32.mrb[1].mxu1  ;;  %4058 = vmatmul.mubr.msk.f32.gmra.mrb[52].mxu1 %vm528_vm0, %v5224_v28  ;;  %4013 = vmatprep.mubr.msk.f32.mxu0 %vm528_vm0, %v5233_v29  ;;  %v5776_v34 = vpop.permute.xlu0 %515 }
 0x132   : > { %v2174_v55 = vmul.f32 0.5, %v1385_v60  ;;  %v1494_v57 = vadd.f32 %v1493_v54, %v5732_v1  ;;  %4059 = vmatprep.mubr.msk.f32.mxu1 %vm528_vm0, %v5233_v29  ;;  %v5787_v51 = vpop.permute.xlu1 %520 }
 0x133   : > { %v2176_v58 = vmul.f32 0.5, %v1492_v52  ;;  %v2175_v59 = vmul.f32 0.5, %v1387_v53  ;;  %v1390_v61 = vpop.f32.mrb[2].mxu0 }
 0x134   : > { %4583 = vtanh.f32 %v2174_v55  ;;  %v2177_v63 = vmul.f32 0.5, %v1494_v57  ;;  %v1391_v28 = vadd.f32 %v1390_v61, %v5749_v14  ;;  %v1497_v2 = vpop.f32.mrb[2].mxu1  ;;  %v1392_v3 = vpop.f32.mrb[3].mxu0  ;;  %4014 = vmatmul.mubr.msk.f32.gmra.mrb[54].mxu0 %vm528_vm0, %v5233_v29 }
 0x135   : > { %4585 = vtanh.f32 %v2176_v58  ;;  %v1498_v4 = vadd.f32 %v1497_v2, %v5749_v14  ;;  %v1393_v5 = vadd.f32 %v1392_v3, %v5749_v14  ;;  %v1499_v6 = vpop.f32.mrb[3].mxu1  ;;  %4060 = vmatmul.mubr.msk.f32.gmra.mrb[54].mxu1 %vm528_vm0, %v5233_v29  ;;  %2740 = vmatprep.mubr.f32.mxu0 %v4874_v7 }
 0x136   : > { %4587 = vtanh.f32 %v2175_v59  ;;  %v2190_v8 = vmul.f32 0.5, %v1391_v28  ;;  %v1500_v9 = vadd.f32 %v1499_v6, %v5749_v14  ;;  %2811 = vmatprep.mubr.f32.mxu1 %v4874_v7 }
 0x137   : > { %4589 = vtanh.f32 %v2177_v63  ;;  %v2192_v10 = vmul.f32 0.5, %v1498_v4  ;;  %v2191_v11 = vmul.f32 0.5, %v1393_v5  ;;  %v1396_v13 = vpop.f32.mrb[4].mxu0 }
 0x138   : > { %4591 = vtanh.f32 %v2190_v8  ;;  %v2193_v15 = vmul.f32 0.5, %v1500_v9  ;;  %v1397_v16 = vadd.f32 %v1396_v13, %v5756_v62  ;;  %v1503_v17 = vpop.f32.mrb[4].mxu1  ;;  %v1398_v18 = vpop.f32.mrb[5].mxu0 }
 0x139   : > { %4593 = vtanh.f32 %v2192_v10  ;;  %v1504_v29 = vadd.f32 %v1503_v17, %v5756_v62  ;;  %v1399_v19 = vadd.f32 %v1398_v18, %v5756_v62  ;;  %v1505_v20 = vpop.f32.mrb[5].mxu1 }
 0x13a   : > { %4595 = vtanh.f32 %v2191_v11  ;;  %v2206_v22 = vmul.f32 0.5, %v1397_v16  ;;  %v1506_v23 = vadd.f32 %v1505_v20, %v5756_v62 }
 0x13b   : > { %4597 = vtanh.f32 %v2193_v15  ;;  %v2208_v24 = vmul.f32 0.5, %v1504_v29  ;;  %v2207_v25 = vmul.f32 0.5, %v1399_v19  ;;  %v1402_v26 = vpop.f32.mrb[6].mxu0 }
 0x13c   : > { %4599 = vtanh.f32 %v2206_v22  ;;  %v2209_v27 = vmul.f32 0.5, %v1506_v23  ;;  %v1509_v30 = vpop.f32.mrb[6].mxu1  ;;  %v1404_v31 = vpop.f32.mrb[7].mxu0  ;;  %v1403_v0 = vadd.f32 %v1402_v26, %v5771_v21 }
 0x13d   : > { %4601 = vtanh.f32 %v2208_v24  ;;  %v1405_v32 = vadd.f32 %v1404_v31, %v5771_v21  ;;  %v1511_v33 = vpop.f32.mrb[7].mxu1  ;;  %v1510_v35 = vadd.f32 %v1509_v30, %v5771_v21 }
 0x13e   : > { %v4584_v36 = vpop.eup %4583  ;;  %4603 = vtanh.f32 %v2207_v25  ;;  %v1512_v37 = vadd.f32 %v1511_v33, %v5771_v21  ;;  %v2222_v38 = vmul.f32 0.5, %v1403_v0 }
 0x13f   : > { %v4586_v39 = vpop.eup %4585  ;;  %v2398_v40 = vmul.f32 0.5, %v4584_v36  ;;  %4605 = vtanh.f32 %v2209_v27  ;;  %v2223_v41 = vmul.f32 0.5, %v1405_v32  ;;  %v1408_v42 = vpop.f32.mrb[8].mxu0  ;;  %v2224_v43 = vmul.f32 0.5, %v1510_v35 }
 0x140   : > { %v4588_v44 = vpop.eup %4587  ;;  %v2400_v45 = vmul.f32 0.5, %v4586_v39  ;;  %v2225_v46 = vmul.f32 0.5, %v1512_v37  ;;  %v5780_v47 = vpop.f32.mrb[8].mxu1  ;;  %4607 = vtanh.f32 %v2222_v38  ;;  %v5783_v49 = vadd.f32 %v1408_v42, %v5776_v34 }
 0x141   : > { %v1410_v48 = vpop.f32.mrb[9].mxu0  ;;  %v4590_v50 = vpop.eup %4589  ;;  %v5785_v56 = vadd.f32 0.5, %v2398_v40  ;;  %v2399_v60 = vmul.f32 0.5, %v4588_v44  ;;  %4609 = vtanh.f32 %v2223_v41 }
 0x142   : > { %v1517_v12 = vpop.f32.mrb[9].mxu1  ;;  %v1411_v52 = vadd.f32 %v1410_v48, %v5776_v34  ;;  %v4592_v53 = vpop.eup %4591  ;;  %v5790_v54 = vadd.f32 0.5, %v2400_v45  ;;  %v2401_v55 = vmul.f32 0.5, %v4590_v50  ;;  %4611 = vtanh.f32 %v2225_v46 }
 0x143   : > { %v1518_v57 = vadd.f32 %v1517_v12, %v5776_v34  ;;  %v4594_v58 = vpop.eup %4593  ;;  %v2511_v59 = vadd.f32 0.5, %v2399_v60  ;;  %v2414_v61 = vmul.f32 0.5, %v4592_v53  ;;  %v1414_v63 = vpop.f32.mrb[10].mxu0  ;;  %4613 = vtanh.f32 %v2224_v43 }
 0x144   : > { %v2239_v28 = vmul.f32 0.5, %v1411_v52  ;;  %v4596_v2 = vpop.eup %4595  ;;  %v2513_v3 = vadd.f32 0.5, %v2401_v55  ;;  %v2416_v4 = vmul.f32 0.5, %v4594_v58  ;;  %v5793_v5 = vpop.f32.mrb[10].mxu1  ;;  %v1415_v9 = vadd.f32 %v1414_v63, %v5787_v51 }
 0x145   : > { %v1416_v6 = vpop.f32.mrb[11].mxu0  ;;  %v2241_v8 = vmul.f32 0.5, %v1518_v57  ;;  %v4598_v10 = vpop.eup %4597  ;;  %v2526_v11 = vadd.f32 0.5, %v2414_v61  ;;  %v2415_v13 = vmul.f32 0.5, %v4596_v2 }
 0x146   : > { %v1417_v15 = vadd.f32 %v1416_v6, %v5787_v51  ;;  %v1523_v16 = vpop.f32.mrb[11].mxu1  ;;  %4615 = vtanh.f32 %v2239_v28  ;;  %v4600_v17 = vpop.eup %4599  ;;  %v2528_v18 = vadd.f32 0.5, %v2416_v4  ;;  %v2417_v29 = vmul.f32 0.5, %v4598_v10 }
 0x147   : > { %v1524_v19 = vadd.f32 %v1523_v16, %v5787_v51  ;;  %4617 = vtanh.f32 %v2241_v8  ;;  %v4602_v20 = vpop.eup %4601  ;;  %v4447_v22 = vpack.c.bf16 %v2526_v11, %v5785_v56  ;;  %v2527_v23 = vadd.f32 0.5, %v2415_v13  ;;  %v1420_v26 = vpop.f32.mrb[12].mxu0 }
 0x148   : > { %v2430_v24 = vmul.f32 0.5, %v4600_v17  ;;  %v2255_v25 = vmul.f32 0.5, %v1417_v15  ;;  %v5799_v27 = vpop.permute.xlu0 %525  ;;  %v4604_v30 = vpop.eup %4603  ;;  %v4459_v31 = vpack.c.bf16 %v2528_v18, %v5790_v54  ;;  %v2529_v0 = vadd.f32 0.5, %v2417_v29 }
 0x149   : > { %v2432_v32 = vmul.f32 0.5, %v4602_v20  ;;  %v2257_v33 = vmul.f32 0.5, %v1524_v19  ;;  %v1527_v35 = vpop.f32.mrb[12].mxu1  ;;  %v1422_v36 = vpop.f32.mrb[13].mxu0  ;;  %v4445_v38 = vpack.c.bf16 %v2527_v23, %v2511_v59  ;;  %v2431_v40 = vmul.f32 0.5, %v4604_v30 }
 0x14a   : > { %v4606_v37 = vpop.eup %4605  ;;  %v2542_v39 = vadd.f32 0.5, %v2430_v24  ;;  %4619 = vtanh.f32 %v2255_v25  ;;  %v1529_v41 = vpop.f32.mrb[13].mxu1  ;;  %v4457_v43 = vpack.c.bf16 %v2529_v0, %v2513_v3  ;;  %v1423_v50 = vadd.f32 %v1422_v36, %v5799_v27 }
 0x14b   : > { %v4608_v42 = vpop.eup %4607  ;;  %v2544_v44 = vadd.f32 0.5, %v2432_v32  ;;  %v2433_v45 = vmul.f32 0.5, %v4606_v37  ;;  %4621 = vtanh.f32 %v2257_v33  ;;  %4446 = vmatprep.subr.bf16.mxu0 %v4445_v38  ;;  %v2543_v48 = vadd.f32 0.5, %v2431_v40 }
 0x14c   : > { %v4610_v46 = vpop.eup %4609  ;;  %v1530_v56 = vadd.f32 %v1529_v41, %v5799_v27  ;;  %v2446_v60 = vmul.f32 0.5, %v4608_v42  ;;  %4458 = vmatprep.subr.bf16.mxu1 %v4457_v43  ;;  %4448 = vmatpush1.bf16.msra.mxu0 %v4447_v22  ;;  %v2238_v54 = vmul.f32 0.5, %v5783_v49  ;;  %v2254_v55 = vmul.f32 0.5, %v1415_v9 }
 0x14d   : > { %v4612_v12 = vpop.eup %4611  ;;  %v2545_v52 = vadd.f32 0.5, %v2433_v45  ;;  %v2447_v53 = vmul.f32 0.5, %v4610_v46  ;;  %4460 = vmatpush1.bf16.msra.mxu1 %v4459_v31  ;;  %v2271_v59 = vmul.f32 0.5, %v1423_v50  ;;  %v1516_v3 = vadd.f32 %v5780_v47, %v5776_v34 }
 0x14e   : > { %v4614_v57 = vpop.eup %4613  ;;  %v2449_v58 = vmul.f32 0.5, %v4612_v12  ;;  %v2273_v61 = vmul.f32 0.5, %v1530_v56  ;;  %v2558_v63 = vadd.f32 0.5, %v2446_v60  ;;  %4623 = vtanh.f32 %v2238_v54 }
 0x14f   : > { %v2559_v28 = vadd.f32 0.5, %v2447_v53  ;;  %v2448_v2 = vmul.f32 0.5, %v4614_v57  ;;  %4625 = vtanh.f32 %v2271_v59  ;;  %v1522_v49 = vadd.f32 %v5793_v5, %v5787_v51 }
 0x150   : > { %v4616_v4 = vpop.eup %4615  ;;  %v2561_v6 = vadd.f32 0.5, %v2449_v58  ;;  %v4451_v8 = vpack.c.bf16 %v2558_v63, %v2542_v39  ;;  %4627 = vtanh.f32 %v2273_v61  ;;  %v2240_v17 = vmul.f32 0.5, %v1516_v3  ;;  %v5815_v63 = vld [vmem:[%s6077_s3] sm:$0x1f] }
 0x151   : > { %v4618_v9 = vpop.eup %4617  ;;  %v4449_v10 = vpack.c.bf16 %v2559_v28, %v2543_v48  ;;  %v2560_v11 = vadd.f32 0.5, %v2448_v2  ;;  %v2463_v13 = vmul.f32 0.5, %v4616_v4  ;;  %4629 = vtanh.f32 %v2254_v55 }
 0x152   : > { %v4461_v15 = vpack.c.bf16 %v2561_v6, %v2545_v52  ;;  %v2465_v16 = vmul.f32 0.5, %v4618_v9  ;;  %v2256_v29 = vmul.f32 0.5, %v1522_v49  ;;  %v1421_v47 = vadd.f32 %v1420_v26, %v5799_v27 }
 0x153   : > { %4450 = vmatprep.subr.bf16.mxu0 %v4449_v10  ;;  %v4463_v18 = vpack.c.bf16 %v2560_v11, %v2544_v44  ;;  %4631 = vtanh.f32 %v2240_v17  ;;  %v1528_v5 = vadd.f32 %v1527_v35, %v5799_v27  ;;  %v2575_v23 = vadd.f32 0.5, %v2463_v13 }
 0x154   : > { %v4620_v19 = vpop.eup %4619  ;;  %4462 = vmatprep.subr.bf16.mxu1 %v4461_v15  ;;  %4452 = vmatpush1.bf16.msra.mxu0 %v4451_v8  ;;  %4633 = vtanh.f32 %v2256_v29  ;;  %v2270_v24 = vmul.f32 0.5, %v1421_v47  ;;  %v2577_v30 = vadd.f32 0.5, %v2465_v16 }
 0x155   : > { %v4622_v20 = vpop.eup %4621  ;;  %v2479_v22 = vmul.f32 0.5, %v4620_v19  ;;  %4464 = vmatpush1.bf16.msra.mxu1 %v4463_v18  ;;  %v2272_v31 = vmul.f32 0.5, %v1528_v5 }
 0x156   : > { %v2481_v25 = vmul.f32 0.5, %v4622_v20  ;;  %4635 = vtanh.f32 %v2270_v24 }
 0x157   : > { %v2591_v0 = vadd.f32 0.5, %v2479_v22  ;;  %4637 = vtanh.f32 %v2272_v31 }
 0x158   : > { %v2593_v32 = vadd.f32 0.5, %v2481_v25  ;;  %v4624_v26 = vpop.eup %4623 }
 0x159   : > { %v4453_v33 = vpack.c.bf16 %v2591_v0, %v2575_v23  ;;  %v4626_v36 = vpop.eup %4625  ;;  %v2462_v38 = vmul.f32 0.5, %v4624_v26 }
 0x15a   : > { %v4465_v37 = vpack.c.bf16 %v2593_v32, %v2577_v30  ;;  %v4628_v39 = vpop.eup %4627  ;;  %v2495_v40 = vmul.f32 0.5, %v4626_v36 }
 0x15b   : > { %4454 = vmatprep.subr.bf16.mxu0 %v4453_v33  ;;  %v4630_v35 = vpop.eup %4629  ;;  %v2574_v42 = vadd.f32 0.5, %v2462_v38  ;;  %v2497_v45 = vmul.f32 0.5, %v4628_v39 }
 0x15c   : > { %4466 = vmatprep.subr.bf16.mxu1 %v4465_v37  ;;  %v2478_v41 = vmul.f32 0.5, %v4630_v35  ;;  %v2607_v50 = vadd.f32 0.5, %v2495_v40 }
 0x15d   : > { %v4632_v43 = vpop.eup %4631  ;;  %v2609_v57 = vadd.f32 0.5, %v2497_v45 }
 0x15e   : > { %v4634_v44 = vpop.eup %4633  ;;  %v2590_v46 = vadd.f32 0.5, %v2478_v41  ;;  %v2464_v48 = vmul.f32 0.5, %v4632_v43 }
 0x15f   : > { %v2480_v56 = vmul.f32 0.5, %v4634_v44 }
 0x160   : > { %v4636_v60 = vpop.eup %4635  ;;  %v4455_v12 = vpack.c.bf16 %v2590_v46, %v2574_v42  ;;  %v2576_v52 = vadd.f32 0.5, %v2464_v48 }
 0x161   : > { %v4638_v53 = vpop.eup %4637  ;;  %v2592_v54 = vadd.f32 0.5, %v2480_v56  ;;  %v2494_v55 = vmul.f32 0.5, %v4636_v60 }
 0x162   : > { %4456 = vmatpush1.bf16.msra.mxu0 %v4455_v12  ;;  %v2496_v58 = vmul.f32 0.5, %v4638_v53 }
 0x163   : > { %v4467_v59 = vpack.c.bf16 %v2592_v54, %v2576_v52  ;;  %3659 = vmatprep.subr.msk.mxu0 %vm2627_vm2, %v2607_v50  ;;  %v2606_v61 = vadd.f32 0.5, %v2494_v55 }
 0x164   : > { %v2608_v28 = vadd.f32 0.5, %v2496_v58 }
 0x165   : > { %4468 = vmatpush1.bf16.msra.mxu1 %v4467_v59 }
 0x166   : > { %3662 = vmatprep.subr.msk.mxu1 %vm2627_vm2, %v2609_v57  ;;  %3660 = vmatpush1.msk.msra.mxu0 %vm2627_vm2, %v2606_v61 }
 0x167   : > { %3661 = vmatmul.mubr.msk.f32.vlgmr.msra.gmra.mrb[56].mxu0 %vm2623_vm3, %v5815_v63 }
 0x168   : > { %2882 = vmatprep.mubr.f32.mxu0 %v4874_v7 }
 0x169   : > { %3663 = vmatpush1.msk.msra.mxu1 %vm2627_vm2, %v2608_v28 }
 0x16a   : > { %3664 = vmatmul.mubr.msk.f32.vlgmr.msra.gmra.mrb[56].mxu1 %vm2623_vm3, %v5815_v63 }
 0x16b   : > { %2953 = vmatprep.mubr.f32.mxu1 %v4874_v7 }
 0x16f   : > { %v1598_v2 = vpop.f32.mrb[14].mxu0 }
 0x170   : > { %v1599_v3 = vadd.f32 %v1598_v2, %v5732_v1  ;;  %v1705_v4 = vpop.f32.mrb[14].mxu1  ;;  %v1600_v6 = vpop.f32.mrb[15].mxu0 }
 0x171   : > { %v1706_v8 = vadd.f32 %v1705_v4, %v5732_v1  ;;  %v1601_v49 = vadd.f32 %v1600_v6, %v5732_v1  ;;  %v1707_v9 = vpop.f32.mrb[15].mxu1 }
 0x172   : > { %v2178_v10 = vmul.f32 0.5, %v1599_v3  ;;  %v1708_v11 = vadd.f32 %v1707_v9, %v5732_v1 }
 0x173   : > { %v2180_v13 = vmul.f32 0.5, %v1706_v8  ;;  %v2179_v15 = vmul.f32 0.5, %v1601_v49  ;;  %v1604_v16 = vpop.f32.mrb[16].mxu0 }
 0x174   : > { %4639 = vtanh.f32 %v2178_v10  ;;  %v2181_v17 = vmul.f32 0.5, %v1708_v11  ;;  %v1605_v18 = vadd.f32 %v1604_v16, %v5749_v14  ;;  %v1711_v29 = vpop.f32.mrb[16].mxu1  ;;  %v1606_v47 = vpop.f32.mrb[17].mxu0 }
 0x175   : > { %4641 = vtanh.f32 %v2180_v13  ;;  %v1712_v19 = vadd.f32 %v1711_v29, %v5749_v14  ;;  %v1607_v5 = vadd.f32 %v1606_v47, %v5749_v14  ;;  %v1713_v20 = vpop.f32.mrb[17].mxu1 }
 0x176   : > { %4643 = vtanh.f32 %v2179_v15  ;;  %v2194_v22 = vmul.f32 0.5, %v1605_v18  ;;  %v1714_v23 = vadd.f32 %v1713_v20, %v5749_v14 }
 0x177   : > { %4645 = vtanh.f32 %v2181_v17  ;;  %v2196_v24 = vmul.f32 0.5, %v1712_v19  ;;  %v2195_v25 = vmul.f32 0.5, %v1607_v5  ;;  %v1610_v30 = vpop.f32.mrb[18].mxu0 }
 0x178   : > { %4647 = vtanh.f32 %v2194_v22  ;;  %v2197_v31 = vmul.f32 0.5, %v1714_v23  ;;  %v1611_v0 = vadd.f32 %v1610_v30, %v5756_v62  ;;  %v1717_v32 = vpop.f32.mrb[18].mxu1  ;;  %v1612_v26 = vpop.f32.mrb[19].mxu0 }
 0x179   : > { %4649 = vtanh.f32 %v2196_v24  ;;  %v1718_v33 = vadd.f32 %v1717_v32, %v5756_v62  ;;  %v1613_v36 = vadd.f32 %v1612_v26, %v5756_v62  ;;  %v1719_v37 = vpop.f32.mrb[19].mxu1 }
 0x17a   : > { %4651 = vtanh.f32 %v2195_v25  ;;  %v2210_v38 = vmul.f32 0.5, %v1611_v0  ;;  %v1720_v39 = vadd.f32 %v1719_v37, %v5756_v62 }
 0x17b   : > { %4653 = vtanh.f32 %v2197_v31  ;;  %v2212_v35 = vmul.f32 0.5, %v1718_v33  ;;  %v2211_v40 = vmul.f32 0.5, %v1613_v36  ;;  %v1616_v41 = vpop.f32.mrb[20].mxu0 }
 0x17c   : > { %4655 = vtanh.f32 %v2210_v38  ;;  %v2213_v42 = vmul.f32 0.5, %v1720_v39  ;;  %v1617_v43 = vadd.f32 %v1616_v41, %v5771_v21  ;;  %v1723_v44 = vpop.f32.mrb[20].mxu1  ;;  %v1618_v45 = vpop.f32.mrb[21].mxu0 }
 0x17d   : > { %4657 = vtanh.f32 %v2212_v35  ;;  %v1724_v46 = vadd.f32 %v1723_v44, %v5771_v21  ;;  %v1619_v48 = vadd.f32 %v1618_v45, %v5771_v21  ;;  %v1725_v50 = vpop.f32.mrb[21].mxu1 }
 0x17e   : > { %v4640_v56 = vpop.eup %4639  ;;  %4659 = vtanh.f32 %v2211_v40  ;;  %v2226_v60 = vmul.f32 0.5, %v1617_v43  ;;  %v1726_v12 = vadd.f32 %v1725_v50, %v5771_v21 }
 0x17f   : > { %v4642_v52 = vpop.eup %4641  ;;  %v2402_v53 = vmul.f32 0.5, %v4640_v56  ;;  %4661 = vtanh.f32 %v2213_v42  ;;  %v2228_v54 = vmul.f32 0.5, %v1724_v46  ;;  %v2227_v55 = vmul.f32 0.5, %v1619_v48  ;;  %v1622_v57 = vpop.f32.mrb[22].mxu0 }
 0x180   : > { %v4644_v58 = vpop.eup %4643  ;;  %v2404_v59 = vmul.f32 0.5, %v4642_v52  ;;  %4663 = vtanh.f32 %v2226_v60  ;;  %v2229_v61 = vmul.f32 0.5, %v1726_v12  ;;  %v1623_v28 = vadd.f32 %v1622_v57, %v5776_v34  ;;  %v1729_v2 = vpop.f32.mrb[22].mxu1 }
 0x181   : > { %v1624_v3 = vpop.f32.mrb[23].mxu0  ;;  %v4646_v4 = vpop.eup %4645  ;;  %v2403_v6 = vmul.f32 0.5, %v4644_v58  ;;  %4665 = vtanh.f32 %v2228_v54  ;;  %v1730_v8 = vadd.f32 %v1729_v2, %v5776_v34  ;;  %v2514_v10 = vadd.f32 0.5, %v2402_v53 }
 0x182   : > { %v1731_v49 = vpop.f32.mrb[23].mxu1  ;;  %v4648_v9 = vpop.eup %4647  ;;  %v2405_v11 = vmul.f32 0.5, %v4646_v4  ;;  %4667 = vtanh.f32 %v2227_v55  ;;  %v2242_v13 = vmul.f32 0.5, %v1623_v28  ;;  %v2516_v16 = vadd.f32 0.5, %v2404_v59 }
 0x183   : > { %v4650_v15 = vpop.eup %4649  ;;  %v2515_v17 = vadd.f32 0.5, %v2403_v6  ;;  %v2418_v18 = vmul.f32 0.5, %v4648_v9  ;;  %4669 = vtanh.f32 %v2229_v61  ;;  %v1628_v29 = vpop.f32.mrb[24].mxu0  ;;  %v2244_v20 = vmul.f32 0.5, %v1730_v8 }
 0x184   : > { %v4652_v47 = vpop.eup %4651  ;;  %v2517_v19 = vadd.f32 0.5, %v2405_v11  ;;  %v2420_v5 = vmul.f32 0.5, %v4650_v15  ;;  %v1625_v22 = vadd.f32 %v1624_v3, %v5776_v34  ;;  %v1735_v23 = vpop.f32.mrb[24].mxu1  ;;  %4671 = vtanh.f32 %v2242_v13 }
 0x185   : > { %v1630_v24 = vpop.f32.mrb[25].mxu0  ;;  %v4654_v25 = vpop.eup %4653  ;;  %v2530_v30 = vadd.f32 0.5, %v2418_v18  ;;  %v2419_v31 = vmul.f32 0.5, %v4652_v47  ;;  %v1732_v0 = vadd.f32 %v1731_v49, %v5776_v34  ;;  %v1629_v38 = vadd.f32 %v1628_v29, %v5787_v51 }
 0x186   : > { %v1737_v32 = vpop.f32.mrb[25].mxu1  ;;  %v4656_v26 = vpop.eup %4655  ;;  %v2532_v33 = vadd.f32 0.5, %v2420_v5  ;;  %v2421_v36 = vmul.f32 0.5, %v4654_v25  ;;  %v2243_v37 = vmul.f32 0.5, %v1625_v22  ;;  %4673 = vtanh.f32 %v2244_v20 }
 0x187   : > { %v4658_v39 = vpop.eup %4657  ;;  %v4471_v35 = vpack.c.bf16 %v2530_v30, %v2514_v10  ;;  %v2531_v40 = vadd.f32 0.5, %v2419_v31  ;;  %v2434_v41 = vmul.f32 0.5, %v4656_v26  ;;  %v2245_v42 = vmul.f32 0.5, %v1732_v0  ;;  %v1634_v43 = vpop.f32.mrb[26].mxu0 }
 0x188   : > { %v4660_v44 = vpop.eup %4659  ;;  %v4483_v45 = vpack.c.bf16 %v2532_v33, %v2516_v16  ;;  %v2533_v46 = vadd.f32 0.5, %v2421_v36  ;;  %v2436_v48 = vmul.f32 0.5, %v4658_v39  ;;  %v1741_v50 = vpop.f32.mrb[26].mxu1  ;;  %4675 = vtanh.f32 %v2243_v37 }
 0x189   : > { %v1636_v56 = vpop.f32.mrb[27].mxu0  ;;  %v4662_v60 = vpop.eup %4661  ;;  %v4469_v12 = vpack.c.bf16 %v2531_v40, %v2515_v17  ;;  %v2546_v52 = vadd.f32 0.5, %v2434_v41  ;;  %v2435_v53 = vmul.f32 0.5, %v4660_v44  ;;  %4677 = vtanh.f32 %v2245_v42 }
 0x18a   : > { %v1743_v54 = vpop.f32.mrb[27].mxu1  ;;  %v4664_v55 = vpop.eup %4663  ;;  %v4481_v57 = vpack.c.bf16 %v2533_v46, %v2517_v19  ;;  %v2548_v58 = vadd.f32 0.5, %v2436_v48  ;;  %v2258_v59 = vmul.f32 0.5, %v1629_v38  ;;  %v2437_v28 = vmul.f32 0.5, %v4662_v60 }
 0x18b   : > { %v4666_v61 = vpop.eup %4665  ;;  %4470 = vmatprep.subr.bf16.mxu0 %v4469_v12  ;;  %v2450_v2 = vmul.f32 0.5, %v4664_v55  ;;  %v1736_v3 = vadd.f32 %v1735_v23, %v5787_v51  ;;  %v1631_v4 = vadd.f32 %v1630_v24, %v5787_v51  ;;  %v2547_v8 = vadd.f32 0.5, %v2435_v53 }
 0x18c   : > { %v4668_v6 = vpop.eup %4667  ;;  %4482 = vmatprep.subr.bf16.mxu1 %v4481_v57  ;;  %4472 = vmatpush1.bf16.msra.mxu0 %v4471_v35  ;;  %v2452_v49 = vmul.f32 0.5, %v4666_v61  ;;  %4679 = vtanh.f32 %v2258_v59  ;;  %v1738_v9 = vadd.f32 %v1737_v32, %v5787_v51  ;;  %v1635_v47 = vadd.f32 %v1634_v43, %v5799_v27 }
 0x18d   : > { %v4670_v10 = vpop.eup %4669  ;;  %4484 = vmatpush1.bf16.msra.mxu1 %v4483_v45  ;;  %v2562_v11 = vadd.f32 0.5, %v2450_v2  ;;  %v2451_v13 = vmul.f32 0.5, %v4668_v6  ;;  %v2260_v15 = vmul.f32 0.5, %v1736_v3  ;;  %v2259_v16 = vmul.f32 0.5, %v1631_v4 }
 0x18e   : > { %v2564_v17 = vadd.f32 0.5, %v2452_v49  ;;  %v2453_v18 = vmul.f32 0.5, %v4670_v10  ;;  %v2261_v29 = vmul.f32 0.5, %v1738_v9  ;;  %v4672_v19 = vpop.eup %4671  ;;  %v2549_v5 = vadd.f32 0.5, %v2437_v28 }
 0x18f   : > { %v4475_v20 = vpack.c.bf16 %v2562_v11, %v2546_v52  ;;  %v2563_v22 = vadd.f32 0.5, %v2451_v13  ;;  %4681 = vtanh.f32 %v2260_v15  ;;  %v2274_v25 = vmul.f32 0.5, %v1635_v47 }
 0x190   : > { %v4487_v23 = vpack.c.bf16 %v2564_v17, %v2548_v58  ;;  %v2565_v24 = vadd.f32 0.5, %v2453_v18  ;;  %4683 = vtanh.f32 %v2259_v16  ;;  %v1742_v30 = vadd.f32 %v1741_v50, %v5799_v27  ;;  %v4674_v31 = vpop.eup %4673 }
 0x191   : > { %4685 = vtanh.f32 %v2261_v29  ;;  %v1637_v0 = vadd.f32 %v1636_v56, %v5799_v27  ;;  %v1744_v32 = vadd.f32 %v1743_v54, %v5799_v27  ;;  %v4473_v26 = vpack.c.bf16 %v2563_v22, %v2547_v8 }
 0x192   : > { %v4676_v33 = vpop.eup %4675  ;;  %v2466_v36 = vmul.f32 0.5, %v4672_v19  ;;  %4687 = vtanh.f32 %v2274_v25  ;;  %v2276_v37 = vmul.f32 0.5, %v1742_v30  ;;  %v4485_v38 = vpack.c.bf16 %v2565_v24, %v2549_v5 }
 0x193   : > { %v4678_v39 = vpop.eup %4677  ;;  %v2275_v35 = vmul.f32 0.5, %v1637_v0  ;;  %v2277_v40 = vmul.f32 0.5, %v1744_v32  ;;  %4474 = vmatprep.subr.bf16.mxu0 %v4473_v26  ;;  %v2468_v42 = vmul.f32 0.5, %v4674_v31  ;;  %v2467_v44 = vmul.f32 0.5, %v4676_v33 }
 0x194   : > { %4689 = vtanh.f32 %v2276_v37  ;;  %4486 = vmatprep.subr.bf16.mxu1 %v4485_v38  ;;  %4476 = vmatpush1.bf16.msra.mxu0 %v4475_v20  ;;  %v2578_v43 = vadd.f32 0.5, %v2466_v36  ;;  %v2469_v46 = vmul.f32 0.5, %v4678_v39 }
 0x195   : > { %4691 = vtanh.f32 %v2275_v35  ;;  %4488 = vmatpush1.bf16.msra.mxu1 %v4487_v23  ;;  %v2580_v60 = vadd.f32 0.5, %v2468_v42  ;;  %v2579_v53 = vadd.f32 0.5, %v2467_v44 }
 0x196   : > { %v4680_v41 = vpop.eup %4679  ;;  %4693 = vtanh.f32 %v2277_v40  ;;  %v2581_v57 = vadd.f32 0.5, %v2469_v46 }
 0x197   : > { %v2482_v45 = vmul.f32 0.5, %v4680_v41 }
 0x199   : > { %v4682_v48 = vpop.eup %4681  ;;  %v2594_v50 = vadd.f32 0.5, %v2482_v45 }
 0x19a   : > { %v4684_v56 = vpop.eup %4683  ;;  %v2484_v12 = vmul.f32 0.5, %v4682_v48 }
 0x19b   : > { %v4686_v52 = vpop.eup %4685  ;;  %v4479_v54 = vpack.c.bf16 %v2594_v50, %v2578_v43  ;;  %v2483_v55 = vmul.f32 0.5, %v4684_v56 }
 0x19c   : > { %v2596_v58 = vadd.f32 0.5, %v2484_v12  ;;  %v2485_v59 = vmul.f32 0.5, %v4686_v52  ;;  %v4688_v61 = vpop.eup %4687 }
 0x19d   : > { %v2595_v28 = vadd.f32 0.5, %v2483_v55  ;;  %v2498_v4 = vmul.f32 0.5, %v4688_v61 }
 0x19e   : > { %v4491_v2 = vpack.c.bf16 %v2596_v58, %v2580_v60  ;;  %v2597_v3 = vadd.f32 0.5, %v2485_v59  ;;  %v4690_v6 = vpop.eup %4689 }
 0x19f   : > { %v4477_v8 = vpack.c.bf16 %v2595_v28, %v2579_v53  ;;  %v4692_v49 = vpop.eup %4691  ;;  %v2500_v9 = vmul.f32 0.5, %v4690_v6  ;;  %v2610_v15 = vadd.f32 0.5, %v2498_v4 }
 0x1a0   : > { %v4489_v10 = vpack.c.bf16 %v2597_v3, %v2581_v57  ;;  %v4694_v11 = vpop.eup %4693  ;;  %v2499_v13 = vmul.f32 0.5, %v4692_v49 }
 0x1a1   : > { %4478 = vmatprep.subr.bf16.mxu0 %v4477_v8  ;;  %v2501_v16 = vmul.f32 0.5, %v4694_v11  ;;  %v2612_v17 = vadd.f32 0.5, %v2500_v9 }
 0x1a2   : > { %4490 = vmatprep.subr.bf16.mxu1 %v4489_v10  ;;  %4480 = vmatpush1.bf16.msra.mxu0 %v4479_v54  ;;  %v2611_v18 = vadd.f32 0.5, %v2499_v13 }
 0x1a3   : > { %4492 = vmatpush1.bf16.msra.mxu1 %v4491_v2  ;;  %v2613_v29 = vadd.f32 0.5, %v2501_v16 }
 0x1a4   : > { %3665 = vmatprep.subr.msk.mxu0 %vm2627_vm2, %v2611_v18 }
 0x1a5   : > { %3668 = vmatprep.subr.msk.mxu1 %vm2627_vm2, %v2613_v29 }
 0x1a6   : > { %3666 = vmatpush1.msk.msra.mxu0 %vm2627_vm2, %v2610_v15 }
 0x1a7   : > { %3669 = vmatpush1.msk.msra.mxu1 %vm2627_vm2, %v2612_v17  ;;  %3667 = vmatmul.mubr.msk.f32.vlgmr.msra.gmra.mrb[58].mxu0 %vm2623_vm3, %v5815_v63 }
 0x1a8   : > { %3670 = vmatmul.mubr.msk.f32.vlgmr.msra.gmra.mrb[58].mxu1 %vm2623_vm3, %v5815_v63  ;;  %3024 = vmatprep.mubr.f32.mxu0 %v4874_v7 }
 0x1a9   : > { %3095 = vmatprep.mubr.f32.mxu1 %v4874_v7 }
 0x1af   : > { %v1812_v47 = vpop.f32.mrb[28].mxu0 }
 0x1b0   : > { %v1813_v19 = vadd.f32 %v1812_v47, %v5732_v1  ;;  %v1919_v5 = vpop.f32.mrb[28].mxu1  ;;  %v1814_v20 = vpop.f32.mrb[29].mxu0 }
 0x1b1   : > { %v1920_v22 = vadd.f32 %v1919_v5, %v5732_v1  ;;  %v1815_v23 = vadd.f32 %v1814_v20, %v5732_v1  ;;  %v1921_v24 = vpop.f32.mrb[29].mxu1 }
 0x1b2   : > { %v2182_v25 = vmul.f32 0.5, %v1813_v19  ;;  %v1922_v30 = vadd.f32 %v1921_v24, %v5732_v1 }
 0x1b3   : > { %v2184_v31 = vmul.f32 0.5, %v1920_v22  ;;  %v2183_v0 = vmul.f32 0.5, %v1815_v23  ;;  %v1818_v32 = vpop.f32.mrb[30].mxu0 }
 0x1b4   : > { %4695 = vtanh.f32 %v2182_v25  ;;  %v2185_v26 = vmul.f32 0.5, %v1922_v30  ;;  %v1819_v33 = vadd.f32 %v1818_v32, %v5749_v14  ;;  %v1925_v36 = vpop.f32.mrb[30].mxu1  ;;  %v1820_v37 = vpop.f32.mrb[31].mxu0 }
 0x1b5   : > { %4697 = vtanh.f32 %v2184_v31  ;;  %v1926_v38 = vadd.f32 %v1925_v36, %v5749_v14  ;;  %v1821_v39 = vadd.f32 %v1820_v37, %v5749_v14  ;;  %v1927_v35 = vpop.f32.mrb[31].mxu1 }
 0x1b6   : > { %4699 = vtanh.f32 %v2183_v0  ;;  %v2198_v40 = vmul.f32 0.5, %v1819_v33  ;;  %v1928_v41 = vadd.f32 %v1927_v35, %v5749_v14 }
 0x1b7   : > { %4701 = vtanh.f32 %v2185_v26  ;;  %v2200_v42 = vmul.f32 0.5, %v1926_v38  ;;  %v2199_v43 = vmul.f32 0.5, %v1821_v39  ;;  %v1824_v44 = vpop.f32.mrb[32].mxu0 }
 0x1b8   : > { %4703 = vtanh.f32 %v2198_v40  ;;  %v2201_v45 = vmul.f32 0.5, %v1928_v41  ;;  %v1825_v46 = vadd.f32 %v1824_v44, %v5756_v62  ;;  %v1931_v48 = vpop.f32.mrb[32].mxu1  ;;  %v1826_v50 = vpop.f32.mrb[33].mxu0 }
 0x1b9   : > { %4705 = vtanh.f32 %v2200_v42  ;;  %v1932_v56 = vadd.f32 %v1931_v48, %v5756_v62  ;;  %v1827_v60 = vadd.f32 %v1826_v50, %v5756_v62  ;;  %v1933_v12 = vpop.f32.mrb[33].mxu1 }
 0x1ba   : > { %4707 = vtanh.f32 %v2199_v43  ;;  %v2214_v52 = vmul.f32 0.5, %v1825_v46  ;;  %v1934_v53 = vadd.f32 %v1933_v12, %v5756_v62 }
 0x1bb   : > { %4709 = vtanh.f32 %v2201_v45  ;;  %v2216_v54 = vmul.f32 0.5, %v1932_v56  ;;  %v2215_v55 = vmul.f32 0.5, %v1827_v60  ;;  %v1830_v57 = vpop.f32.mrb[34].mxu0 }
 0x1bc   : > { %4711 = vtanh.f32 %v2214_v52  ;;  %v2217_v58 = vmul.f32 0.5, %v1934_v53  ;;  %v1831_v59 = vadd.f32 %v1830_v57, %v5771_v21  ;;  %v1937_v61 = vpop.f32.mrb[34].mxu1  ;;  %v1832_v28 = vpop.f32.mrb[35].mxu0 }
 0x1bd   : > { %4713 = vtanh.f32 %v2216_v54  ;;  %v1938_v2 = vadd.f32 %v1937_v61, %v5771_v21  ;;  %v1833_v3 = vadd.f32 %v1832_v28, %v5771_v21  ;;  %v1939_v4 = vpop.f32.mrb[35].mxu1 }
 0x1be   : > { %v4696_v6 = vpop.eup %4695  ;;  %4715 = vtanh.f32 %v2215_v55  ;;  %v2230_v8 = vmul.f32 0.5, %v1831_v59  ;;  %v1940_v49 = vadd.f32 %v1939_v4, %v5771_v21 }
 0x1bf   : > { %v4698_v9 = vpop.eup %4697  ;;  %v2406_v10 = vmul.f32 0.5, %v4696_v6  ;;  %4717 = vtanh.f32 %v2217_v58  ;;  %v2232_v11 = vmul.f32 0.5, %v1938_v2  ;;  %v2231_v13 = vmul.f32 0.5, %v1833_v3  ;;  %v1836_v15 = vpop.f32.mrb[36].mxu0 }
 0x1c0   : > { %v4700_v16 = vpop.eup %4699  ;;  %v2408_v17 = vmul.f32 0.5, %v4698_v9  ;;  %4719 = vtanh.f32 %v2230_v8  ;;  %v2233_v18 = vmul.f32 0.5, %v1940_v49  ;;  %v1837_v29 = vadd.f32 %v1836_v15, %v5776_v34  ;;  %v1943_v47 = vpop.f32.mrb[36].mxu1 }
 0x1c1   : > { %v1838_v19 = vpop.f32.mrb[37].mxu0  ;;  %v4702_v5 = vpop.eup %4701  ;;  %v2407_v20 = vmul.f32 0.5, %v4700_v16  ;;  %4721 = vtanh.f32 %v2232_v11  ;;  %v1944_v22 = vadd.f32 %v1943_v47, %v5776_v34  ;;  %v5883_v25 = vadd.f32 0.5, %v2406_v10 }
 0x1c2   : > { %v1945_v23 = vpop.f32.mrb[37].mxu1  ;;  %v4704_v24 = vpop.eup %4703  ;;  %4723 = vtanh.f32 %v2231_v13  ;;  %v2246_v30 = vmul.f32 0.5, %v1837_v29  ;;  %v5885_v0 = vadd.f32 0.5, %v2408_v17  ;;  %v2409_v32 = vmul.f32 0.5, %v4702_v5 }
 0x1c3   : > { %v4706_v31 = vpop.eup %4705  ;;  %v2422_v26 = vmul.f32 0.5, %v4704_v24  ;;  %4725 = vtanh.f32 %v2233_v18  ;;  %v1842_v33 = vpop.f32.mrb[38].mxu0  ;;  %v5887_v37 = vadd.f32 0.5, %v2407_v20  ;;  %v2248_v39 = vmul.f32 0.5, %v1944_v22 }
 0x1c4   : > { %v4708_v36 = vpop.eup %4707  ;;  %v2424_v38 = vmul.f32 0.5, %v4706_v31  ;;  %v1839_v35 = vadd.f32 %v1838_v19, %v5776_v34  ;;  %v1949_v40 = vpop.f32.mrb[38].mxu1  ;;  %4727 = vtanh.f32 %v2246_v30  ;;  %v1946_v45 = vadd.f32 %v1945_v23, %v5776_v34 }
 0x1c5   : > { %v1844_v41 = vpop.f32.mrb[39].mxu0  ;;  %v4710_v42 = vpop.eup %4709  ;;  %v5890_v43 = vadd.f32 0.5, %v2422_v26  ;;  %v2423_v44 = vmul.f32 0.5, %v4708_v36  ;;  %v1843_v12 = vadd.f32 %v1842_v33, %v5787_v51  ;;  %v5896_v53 = vadd.f32 0.5, %v2409_v32 }
 0x1c6   : > { %v1951_v46 = vpop.f32.mrb[39].mxu1  ;;  %v4712_v48 = vpop.eup %4711  ;;  %v5893_v50 = vadd.f32 0.5, %v2424_v38  ;;  %v2425_v56 = vmul.f32 0.5, %v4710_v42  ;;  %v2247_v60 = vmul.f32 0.5, %v1839_v35  ;;  %v2249_v57 = vmul.f32 0.5, %v1946_v45 }
 0x1c7   : > { %v4714_v52 = vpop.eup %4713  ;;  %v4495_v54 = vpack.c.bf16 %v5890_v43, %v5883_v25  ;;  %v2438_v55 = vmul.f32 0.5, %v4712_v48  ;;  %v1848_v58 = vpop.f32.mrb[40].mxu0  ;;  %v2535_v28 = vadd.f32 0.5, %v2423_v44  ;;  %4729 = vtanh.f32 %v2248_v39 }
 0x1c8   : > { %v4716_v59 = vpop.eup %4715  ;;  %v4507_v61 = vpack.c.bf16 %v5893_v50, %v5885_v0  ;;  %v2440_v2 = vmul.f32 0.5, %v4714_v52  ;;  %v1955_v3 = vpop.f32.mrb[40].mxu1  ;;  %v2537_v8 = vadd.f32 0.5, %v2425_v56  ;;  %4731 = vtanh.f32 %v2247_v60 }
 0x1c9   : > { %v1850_v4 = vpop.f32.mrb[41].mxu0  ;;  %v4718_v6 = vpop.eup %4717  ;;  %v5902_v49 = vadd.f32 0.5, %v2438_v55  ;;  %v2262_v9 = vmul.f32 0.5, %v1843_v12  ;;  %v2439_v13 = vmul.f32 0.5, %v4716_v59  ;;  %4733 = vtanh.f32 %v2249_v57 }
 0x1ca   : > { %v1957_v10 = vpop.f32.mrb[41].mxu1  ;;  %v4720_v11 = vpop.eup %4719  ;;  %v1950_v15 = vadd.f32 %v1949_v40, %v5787_v51  ;;  %v1845_v16 = vadd.f32 %v1844_v41, %v5787_v51  ;;  %v5906_v18 = vadd.f32 0.5, %v2440_v2  ;;  %v1952_v47 = vadd.f32 %v1951_v46, %v5787_v51 }
 0x1cb   : > { %v4722_v17 = vpop.eup %4721  ;;  %v2454_v29 = vmul.f32 0.5, %v4720_v11  ;;  %4735 = vtanh.f32 %v2262_v9  ;;  %v2441_v5 = vmul.f32 0.5, %v4718_v6  ;;  %v1849_v26 = vadd.f32 %v1848_v58, %v5799_v27 }
 0x1cc   : > { %v4724_v19 = vpop.eup %4723  ;;  %v2456_v20 = vmul.f32 0.5, %v4722_v17  ;;  %v2264_v22 = vmul.f32 0.5, %v1950_v15  ;;  %v2263_v23 = vmul.f32 0.5, %v1845_v16  ;;  %v2265_v32 = vmul.f32 0.5, %v1952_v47 }
 0x1cd   : > { %v4726_v24 = vpop.eup %4725  ;;  %v2566_v30 = vadd.f32 0.5, %v2454_v29  ;;  %v2455_v31 = vmul.f32 0.5, %v4724_v19  ;;  %v1956_v38 = vadd.f32 %v1955_v3, %v5799_v27  ;;  %v2551_v35 = vadd.f32 0.5, %v2439_v13 }
 0x1ce   : > { %v2568_v33 = vadd.f32 0.5, %v2456_v20  ;;  %v2457_v36 = vmul.f32 0.5, %v4726_v24  ;;  %4737 = vtanh.f32 %v2264_v22  ;;  %v4728_v39 = vpop.eup %4727  ;;  %v2553_v42 = vadd.f32 0.5, %v2441_v5 }
 0x1cf   : > { %v4499_v40 = vpack.c.bf16 %v2566_v30, %v5902_v49  ;;  %v2567_v41 = vadd.f32 0.5, %v2455_v31  ;;  %4739 = vtanh.f32 %v2263_v23  ;;  %v2278_v46 = vmul.f32 0.5, %v1849_v26 }
 0x1d0   : > { %v4511_v44 = vpack.c.bf16 %v2568_v33, %v5906_v18  ;;  %v2569_v45 = vadd.f32 0.5, %v2457_v36  ;;  %4741 = vtanh.f32 %v2265_v32  ;;  %v2280_v48 = vmul.f32 0.5, %v1956_v38 }
 0x1d1   : > { %v1851_v56 = vadd.f32 %v1850_v4, %v5799_v27  ;;  %v4730_v60 = vpop.eup %4729  ;;  %v2470_v12 = vmul.f32 0.5, %v4728_v39  ;;  %v1958_v52 = vadd.f32 %v1957_v10, %v5799_v27  ;;  %v4493_v55 = vpack.c.bf16 %v2535_v28, %v5887_v37 }
 0x1d2   : > { %v4505_v57 = vpack.c.bf16 %v2537_v8, %v5896_v53  ;;  %v4732_v58 = vpop.eup %4731  ;;  %4743 = vtanh.f32 %v2278_v46  ;;  %v4497_v2 = vpack.c.bf16 %v2567_v41, %v2551_v35  ;;  %v4509_v49 = vpack.c.bf16 %v2569_v45, %v2553_v42 }
 0x1d3   : > { %v2279_v59 = vmul.f32 0.5, %v1851_v56  ;;  %v4734_v3 = vpop.eup %4733  ;;  %4745 = vtanh.f32 %v2280_v48  ;;  %v2281_v6 = vmul.f32 0.5, %v1958_v52  ;;  %4494 = vmatprep.subr.bf16.mxu0 %v4493_v55  ;;  %v2472_v4 = vmul.f32 0.5, %v4730_v60 }
 0x1d4   : > { %4506 = vmatprep.subr.bf16.mxu1 %v4505_v57  ;;  %4496 = vmatpush1.bf16.msra.mxu0 %v4495_v54  ;;  %v2582_v37 = vadd.f32 0.5, %v2470_v12  ;;  %v2471_v53 = vmul.f32 0.5, %v4732_v58  ;;  %v2473_v8 = vmul.f32 0.5, %v4734_v3 }
 0x1d5   : > { %v4736_v9 = vpop.eup %4735  ;;  %4747 = vtanh.f32 %v2279_v59  ;;  %4508 = vmatpush1.bf16.msra.mxu1 %v4507_v61  ;;  %4498 = vmatprep.subr.bf16.mxu0 %v4497_v2  ;;  %v2584_v15 = vadd.f32 0.5, %v2472_v4 }
 0x1d6   : > { %v2486_v28 = vmul.f32 0.5, %v4736_v9  ;;  %4749 = vtanh.f32 %v2281_v6  ;;  %4510 = vmatprep.subr.bf16.mxu1 %v4509_v49  ;;  %v2583_v43 = vadd.f32 0.5, %v2471_v53  ;;  %v2585_v0 = vadd.f32 0.5, %v2473_v8 }
 0x1d8   : > { %v4738_v10 = vpop.eup %4737  ;;  %v2598_v11 = vadd.f32 0.5, %v2486_v28  ;;  %4500 = vmatpush1.bf16.msra.mxu0 %v4499_v40 }
 0x1d9   : > { %v4740_v13 = vpop.eup %4739  ;;  %v2488_v16 = vmul.f32 0.5, %v4738_v10  ;;  %4512 = vmatpush1.bf16.msra.mxu1 %v4511_v44 }
 0x1da   : > { %v4742_v25 = vpop.eup %4741  ;;  %v4503_v54 = vpack.c.bf16 %v2598_v11, %v2582_v37  ;;  %v2487_v17 = vmul.f32 0.5, %v4740_v13 }
 0x1db   : > { %v2600_v50 = vadd.f32 0.5, %v2488_v16  ;;  %v2489_v61 = vmul.f32 0.5, %v4742_v25 }
 0x1dc   : > { %v2599_v18 = vadd.f32 0.5, %v2487_v17  ;;  %v4744_v29 = vpop.eup %4743 }
 0x1dd   : > { %v4515_v47 = vpack.c.bf16 %v2600_v50, %v2584_v15  ;;  %v2601_v19 = vadd.f32 0.5, %v2489_v61  ;;  %v4746_v5 = vpop.eup %4745  ;;  %v2502_v20 = vmul.f32 0.5, %v4744_v29 }
 0x1de   : > { %v4501_v22 = vpack.c.bf16 %v2599_v18, %v2583_v43  ;;  %v2504_v24 = vmul.f32 0.5, %v4746_v5 }
 0x1df   : > { %v4748_v23 = vpop.eup %4747  ;;  %v4513_v30 = vpack.c.bf16 %v2601_v19, %v2585_v0  ;;  %v2614_v26 = vadd.f32 0.5, %v2502_v20 }
 0x1e0   : > { %v4750_v31 = vpop.eup %4749  ;;  %v2503_v32 = vmul.f32 0.5, %v4748_v23  ;;  %4502 = vmatprep.subr.bf16.mxu0 %v4501_v22  ;;  %v2616_v36 = vadd.f32 0.5, %v2504_v24 }
 0x1e1   : > { %v2505_v33 = vmul.f32 0.5, %v4750_v31  ;;  %4514 = vmatprep.subr.bf16.mxu1 %v4513_v30  ;;  %4504 = vmatpush1.bf16.msra.mxu0 %v4503_v54 }
 0x1e2   : > { %v2615_v38 = vadd.f32 0.5, %v2503_v32  ;;  %4516 = vmatpush1.bf16.msra.mxu1 %v4515_v47 }
 0x1e3   : > { %v2617_v39 = vadd.f32 0.5, %v2505_v33 }
 0x1e4   : > { %3671 = vmatprep.subr.msk.mxu0 %vm2627_vm2, %v2615_v38 }
 0x1e5   : > { %3674 = vmatprep.subr.msk.mxu1 %vm2627_vm2, %v2617_v39  ;;  %3672 = vmatpush1.msk.msra.mxu0 %vm2627_vm2, %v2614_v26 }
 0x1e6   : > { %3675 = vmatpush1.msk.msra.mxu1 %vm2627_vm2, %v2616_v36  ;;  %3673 = vmatmul.mubr.msk.f32.vlgmr.msra.gmra.mrb[60].mxu0 %vm2623_vm3, %v5815_v63 }
 0x1e7   : > { %3676 = vmatmul.mubr.msk.f32.vlgmr.msra.gmra.mrb[60].mxu1 %vm2623_vm3, %v5815_v63  ;;  %3166 = vmatprep.mubr.f32.mxu0 %v4874_v7 }
 0x1e8   : > { %3237 = vmatprep.mubr.f32.mxu1 %v4874_v7 }
 0x1ef   : > { %v2026_v35 = vpop.f32.mrb[42].mxu0 }
 0x1f0   : > { %v2027_v40 = vadd.f32 %v2026_v35, %v5732_v1  ;;  %v2133_v41 = vpop.f32.mrb[42].mxu1  ;;  %v2028_v42 = vpop.f32.mrb[43].mxu0 }
 0x1f1   : > { %v2134_v44 = vadd.f32 %v2133_v41, %v5732_v1  ;;  %v2029_v45 = vadd.f32 %v2028_v42, %v5732_v1  ;;  %v2135_v46 = vpop.f32.mrb[43].mxu1 }
 0x1f2   : > { %v2186_v48 = vmul.f32 0.5, %v2027_v40  ;;  %v2136_v56 = vadd.f32 %v2135_v46, %v5732_v1 }
 0x1f3   : > { %v2188_v60 = vmul.f32 0.5, %v2134_v44  ;;  %v2187_v12 = vmul.f32 0.5, %v2029_v45  ;;  %v2032_v63 = vpop.f32.mrb[44].mxu0 }
 0x1f4   : > { %4751 = vtanh.f32 %v2186_v48  ;;  %v2189_v52 = vmul.f32 0.5, %v2136_v56  ;;  %v2033_v7 = vadd.f32 %v2032_v63, %v5749_v14  ;;  %v2139_v55 = vpop.f32.mrb[44].mxu1  ;;  %v2034_v57 = vpop.f32.mrb[45].mxu0 }
 0x1f5   : > { %4753 = vtanh.f32 %v2188_v60  ;;  %v2140_v58 = vadd.f32 %v2139_v55, %v5749_v14  ;;  %v2035_v59 = vadd.f32 %v2034_v57, %v5749_v14  ;;  %v2141_v2 = vpop.f32.mrb[45].mxu1 }
 0x1f6   : > { %4755 = vtanh.f32 %v2187_v12  ;;  %v2202_v3 = vmul.f32 0.5, %v2033_v7  ;;  %v2142_v6 = vadd.f32 %v2141_v2, %v5749_v14 }
 0x1f7   : > { %4757 = vtanh.f32 %v2189_v52  ;;  %v2204_v1 = vmul.f32 0.5, %v2140_v58  ;;  %v2203_v49 = vmul.f32 0.5, %v2035_v59  ;;  %v2038_v9 = vpop.f32.mrb[46].mxu0 }
 0x1f8   : > { %4759 = vtanh.f32 %v2202_v3  ;;  %v2205_v4 = vmul.f32 0.5, %v2142_v6  ;;  %v2039_v37 = vadd.f32 %v2038_v9, %v5756_v62  ;;  %v2145_v53 = vpop.f32.mrb[46].mxu1  ;;  %v2040_v28 = vpop.f32.mrb[47].mxu0 }
 0x1f9   : > { %4761 = vtanh.f32 %v2204_v1  ;;  %v2146_v8 = vadd.f32 %v2145_v53, %v5756_v62  ;;  %v2041_v10 = vadd.f32 %v2040_v28, %v5756_v62  ;;  %v2147_v11 = vpop.f32.mrb[47].mxu1 }
 0x1fa   : > { %4763 = vtanh.f32 %v2203_v49  ;;  %v2218_v13 = vmul.f32 0.5, %v2039_v37  ;;  %v2148_v14 = vadd.f32 %v2147_v11, %v5756_v62 }
 0x1fb   : > { %4765 = vtanh.f32 %v2205_v4  ;;  %v2220_v15 = vmul.f32 0.5, %v2146_v8  ;;  %v2219_v16 = vmul.f32 0.5, %v2041_v10  ;;  %v2044_v25 = vpop.f32.mrb[48].mxu0 }
 0x1fc   : > { %4767 = vtanh.f32 %v2218_v13  ;;  %v2221_v43 = vmul.f32 0.5, %v2148_v14  ;;  %v2045_v54 = vadd.f32 %v2044_v25, %v5771_v21  ;;  %v2151_v17 = vpop.f32.mrb[48].mxu1  ;;  %v2046_v0 = vpop.f32.mrb[49].mxu0 }
 0x1fd   : > { %4769 = vtanh.f32 %v2220_v15  ;;  %v2152_v50 = vadd.f32 %v2151_v17, %v5771_v21  ;;  %v2047_v61 = vadd.f32 %v2046_v0, %v5771_v21  ;;  %v2153_v18 = vpop.f32.mrb[49].mxu1 }
 0x1fe   : > { %v4752_v29 = vpop.eup %4751  ;;  %4771 = vtanh.f32 %v2219_v16  ;;  %v2234_v47 = vmul.f32 0.5, %v2045_v54  ;;  %v2154_v62 = vadd.f32 %v2153_v18, %v5771_v21 }
 0x1ff   : > { %v4754_v19 = vpop.eup %4753  ;;  %v2410_v5 = vmul.f32 0.5, %v4752_v29  ;;  %4773 = vtanh.f32 %v2221_v43  ;;  %v2236_v20 = vmul.f32 0.5, %v2152_v50  ;;  %v2235_v22 = vmul.f32 0.5, %v2047_v61  ;;  %v2050_v23 = vpop.f32.mrb[50].mxu0 }
 0x200   : > { %v4756_v24 = vpop.eup %4755  ;;  %v2412_v30 = vmul.f32 0.5, %v4754_v19  ;;  %4775 = vtanh.f32 %v2234_v47  ;;  %v2237_v31 = vmul.f32 0.5, %v2154_v62  ;;  %v2051_v32 = vadd.f32 %v2050_v23, %v5776_v34  ;;  %v2157_v26 = vpop.f32.mrb[50].mxu1 }
 0x201   : > { %v2052_v33 = vpop.f32.mrb[51].mxu0  ;;  %v4758_v36 = vpop.eup %4757  ;;  %4777 = vtanh.f32 %v2236_v20  ;;  %v2158_v38 = vadd.f32 %v2157_v26, %v5776_v34  ;;  %v5951_v35 = vadd.f32 0.5, %v2410_v5  ;;  %v5953_v41 = vmul.f32 0.5, %v4756_v24 }
 0x202   : > { %v2159_v39 = vpop.f32.mrb[51].mxu1  ;;  %v4760_v21 = vpop.eup %4759  ;;  %4779 = vtanh.f32 %v2235_v22  ;;  %v2250_v44 = vmul.f32 0.5, %v2051_v32  ;;  %v5955_v48 = vadd.f32 0.5, %v2412_v30  ;;  %v2053_v12 = vadd.f32 %v2052_v33, %v5776_v34 }
 0x203   : > { %v4762_v40 = vpop.eup %4761  ;;  %v2426_v42 = vmul.f32 0.5, %v4760_v21  ;;  %4781 = vtanh.f32 %v2237_v31  ;;  %v2056_v45 = vpop.f32.mrb[52].mxu0  ;;  %v2252_v60 = vmul.f32 0.5, %v2158_v38  ;;  %v2413_v55 = vmul.f32 0.5, %v4758_v36 }
 0x204   : > { %v4764_v46 = vpop.eup %4763  ;;  %v2428_v56 = vmul.f32 0.5, %v4762_v40  ;;  %v2163_v63 = vpop.f32.mrb[52].mxu1  ;;  %v2160_v59 = vadd.f32 %v2159_v39, %v5776_v34  ;;  %v2251_v49 = vmul.f32 0.5, %v2053_v12  ;;  %v2057_v9 = vadd.f32 %v2056_v45, %v5787_v51 }
 0x205   : > { %v2058_v52 = vpop.f32.mrb[53].mxu0  ;;  %v4766_v7 = vpop.eup %4765  ;;  %v5958_v57 = vadd.f32 0.5, %v2426_v42  ;;  %v2427_v58 = vmul.f32 0.5, %v4764_v46  ;;  %4783 = vtanh.f32 %v2250_v44  ;;  %v2164_v61 = vadd.f32 %v2163_v63, %v5787_v51 }
 0x206   : > { %v2165_v2 = vpop.f32.mrb[53].mxu1  ;;  %v4768_v3 = vpop.eup %4767  ;;  %v5961_v6 = vadd.f32 0.5, %v2428_v56  ;;  %v2429_v1 = vmul.f32 0.5, %v4766_v7  ;;  %v2253_v28 = vmul.f32 0.5, %v2160_v59  ;;  %4785 = vtanh.f32 %v2252_v60 }
 0x207   : > { %v4770_v4 = vpop.eup %4769  ;;  %v4519_v37 = vpack.c.bf16 %v5958_v57, %v5951_v35  ;;  %v2442_v53 = vmul.f32 0.5, %v4768_v3  ;;  %v2062_v8 = vpop.f32.mrb[54].mxu0  ;;  %v2539_v11 = vadd.f32 0.5, %v2427_v58  ;;  %4787 = vtanh.f32 %v2251_v49 }
 0x208   : > { %v4772_v10 = vpop.eup %4771  ;;  %v4531_v34 = vpack.c.bf16 %v5961_v6, %v5955_v48  ;;  %v2444_v13 = vmul.f32 0.5, %v4770_v4  ;;  %v2169_v14 = vpop.f32.mrb[54].mxu1  ;;  %v2541_v25 = vadd.f32 0.5, %v2429_v1  ;;  %v2266_v54 = vmul.f32 0.5, %v2057_v9 }
 0x209   : > { %v2064_v15 = vpop.f32.mrb[55].mxu0  ;;  %v4774_v16 = vpop.eup %4773  ;;  %v5968_v43 = vadd.f32 0.5, %v2442_v53  ;;  %v2443_v50 = vmul.f32 0.5, %v4772_v10  ;;  %4789 = vtanh.f32 %v2253_v28  ;;  %v2059_v18 = vadd.f32 %v2058_v52, %v5787_v51 }
 0x20a   : > { %v2171_v17 = vpop.f32.mrb[55].mxu1  ;;  %v4776_v0 = vpop.eup %4775  ;;  %v5972_v47 = vadd.f32 0.5, %v2444_v13  ;;  %4791 = vtanh.f32 %v2266_v54  ;;  %v2166_v19 = vadd.f32 %v2165_v2, %v5787_v51  ;;  %v2445_v20 = vmul.f32 0.5, %v4774_v16 }
 0x20b   : > { %v4778_v29 = vpop.eup %4777  ;;  %v2458_v62 = vmul.f32 0.5, %v4776_v0  ;;  %v2268_v23 = vmul.f32 0.5, %v2164_v61  ;;  %v2267_v24 = vmul.f32 0.5, %v2059_v18  ;;  %v2063_v33 = vadd.f32 %v2062_v8, %v5799_v27 }
 0x20c   : > { %v4780_v5 = vpop.eup %4779  ;;  %v2460_v22 = vmul.f32 0.5, %v4778_v29  ;;  %v2269_v26 = vmul.f32 0.5, %v2166_v19  ;;  %v2170_v39 = vadd.f32 %v2169_v14, %v5799_v27  ;;  %v2523_v21 = vadd.f32 0.5, %v5953_v41 }
 0x20d   : > { %v4782_v30 = vpop.eup %4781  ;;  %v2570_v31 = vadd.f32 0.5, %v2458_v62  ;;  %v2459_v32 = vmul.f32 0.5, %v4780_v5  ;;  %4793 = vtanh.f32 %v2268_v23  ;;  %v2525_v42 = vadd.f32 0.5, %v2413_v55 }
 0x20e   : > { %v2572_v36 = vadd.f32 0.5, %v2460_v22  ;;  %v2461_v38 = vmul.f32 0.5, %v4782_v30  ;;  %4795 = vtanh.f32 %v2267_v24  ;;  %v2555_v56 = vadd.f32 0.5, %v2443_v50 }
 0x20f   : > { %v4523_v51 = vpack.c.bf16 %v2570_v31, %v5968_v43  ;;  %v2571_v40 = vadd.f32 0.5, %v2459_v32  ;;  %4797 = vtanh.f32 %v2269_v26  ;;  %v4784_v46 = vpop.eup %4783  ;;  %v2282_v60 = vmul.f32 0.5, %v2063_v33  ;;  %v4808_v32 = vld [vmem:[%s6077_s3] sm:$0x1f] }
 0x210   : > { %v4535_v44 = vpack.c.bf16 %v2572_v36, %v5972_v47  ;;  %v2573_v45 = vadd.f32 0.5, %v2461_v38  ;;  %v2284_v12 = vmul.f32 0.5, %v2170_v39  ;;  %v2065_v63 = vadd.f32 %v2064_v15, %v5799_v27  ;;  %v4786_v52 = vpop.eup %4785 }
 0x211   : > { %v2557_v7 = vadd.f32 0.5, %v2445_v20  ;;  %v2172_v58 = vadd.f32 %v2171_v17, %v5799_v27  ;;  %v4517_v41 = vpack.c.bf16 %v2539_v11, %v2523_v21  ;;  %v4529_v59 = vpack.c.bf16 %v2541_v25, %v2525_v42  ;;  %v4788_v2 = vpop.eup %4787 }
 0x212   : > { %4799 = vtanh.f32 %v2282_v60  ;;  %v2283_v3 = vmul.f32 0.5, %v2065_v63  ;;  %v4521_v55 = vpack.c.bf16 %v2571_v40, %v2555_v56  ;;  %v2474_v49 = vmul.f32 0.5, %v4784_v46 }
 0x213   : > { %v4790_v1 = vpop.eup %4789  ;;  %4801 = vtanh.f32 %v2284_v12  ;;  %v2285_v9 = vmul.f32 0.5, %v2172_v58  ;;  %4518 = vmatprep.subr.bf16.mxu0 %v4517_v41  ;;  %4530 = vmatprep.subr.bf16.mxu1 %v4529_v59  ;;  %v4533_v4 = vpack.c.bf16 %v2573_v45, %v2557_v7  ;;  %v2476_v28 = vmul.f32 0.5, %v4786_v52 }
 0x214   : > { %v4792_v53 = vpop.eup %4791  ;;  %4803 = vtanh.f32 %v2283_v3  ;;  %4520 = vmatpush1.bf16.msra.mxu0 %v4519_v37  ;;  %4532 = vmatpush1.bf16.msra.mxu1 %v4531_v34  ;;  %v2586_v10 = vadd.f32 0.5, %v2474_v49  ;;  %v2475_v11 = vmul.f32 0.5, %v4788_v2  ;;  %v2477_v15 = vmul.f32 0.5, %v4790_v1 }
 0x215   : > { %v2490_v27 = vmul.f32 0.5, %v4792_v53  ;;  %4805 = vtanh.f32 %v2285_v9  ;;  %4522 = vmatprep.subr.bf16.mxu0 %v4521_v55  ;;  %4534 = vmatprep.subr.bf16.mxu1 %v4533_v4  ;;  %v2588_v25 = vadd.f32 0.5, %v2476_v28 }
 0x216   : > { %v2587_v34 = vadd.f32 0.5, %v2475_v11  ;;  %v2589_v17 = vadd.f32 0.5, %v2477_v15 }
 0x217   : > { %v4794_v8 = vpop.eup %4793  ;;  %v2602_v13 = vadd.f32 0.5, %v2490_v27 }
 0x218   : > { %v4796_v14 = vpop.eup %4795  ;;  %v2492_v16 = vmul.f32 0.5, %v4794_v8  ;;  %4524 = vmatpush1.bf16.msra.mxu0 %v4523_v51  ;;  %4536 = vmatpush1.bf16.msra.mxu1 %v4535_v44 }
 0x219   : > { %v4798_v35 = vpop.eup %4797  ;;  %v4527_v57 = vpack.c.bf16 %v2602_v13, %v2586_v10  ;;  %v2491_v37 = vmul.f32 0.5, %v4796_v14 }
 0x21a   : > { %v2604_v48 = vadd.f32 0.5, %v2492_v16  ;;  %v2493_v6 = vmul.f32 0.5, %v4798_v35 }
 0x21b   : > { %v2603_v43 = vadd.f32 0.5, %v2491_v37 }
 0x21c   : > { %v4800_v54 = vpop.eup %4799  ;;  %v4539_v0 = vpack.c.bf16 %v2604_v48, %v2588_v25  ;;  %v2605_v50 = vadd.f32 0.5, %v2493_v6 }
 0x21d   : > { %v4802_v61 = vpop.eup %4801  ;;  %v4525_v18 = vpack.c.bf16 %v2603_v43, %v2587_v34  ;;  %v2506_v47 = vmul.f32 0.5, %v4800_v54 }
 0x21e   : > { %v4804_v29 = vpop.eup %4803  ;;  %v4537_v62 = vpack.c.bf16 %v2605_v50, %v2589_v17  ;;  %v2508_v5 = vmul.f32 0.5, %v4802_v61 }
 0x21f   : > { %v4806_v19 = vpop.eup %4805  ;;  %v2507_v20 = vmul.f32 0.5, %v4804_v29  ;;  %4526 = vmatprep.subr.bf16.mxu0 %v4525_v18  ;;  %v2618_v24 = vadd.f32 0.5, %v2506_v47 }
 0x220   : > { %v2509_v22 = vmul.f32 0.5, %v4806_v19  ;;  %4538 = vmatprep.subr.bf16.mxu1 %v4537_v62  ;;  %4528 = vmatpush1.bf16.msra.mxu0 %v4527_v57  ;;  %v2620_v31 = vadd.f32 0.5, %v2508_v5 }
 0x221   : > { %v2619_v23 = vadd.f32 0.5, %v2507_v20  ;;  %4540 = vmatpush1.bf16.msra.mxu1 %v4539_v0 }
 0x222   : > { %v2621_v30 = vadd.f32 0.5, %v2509_v22 }
 0x223   : > { %3677 = vmatprep.subr.msk.mxu0 %vm2627_vm2, %v2619_v23 }
 0x224   : > { %3680 = vmatprep.subr.msk.mxu1 %vm2627_vm2, %v2621_v30  ;;  %3678 = vmatpush1.msk.msra.mxu0 %vm2627_vm2, %v2618_v24 }
 0x225   : > { %3681 = vmatpush1.msk.msra.mxu1 %vm2627_vm2, %v2620_v31  ;;  %3679 = vmatmul.mubr.msk.f32.vlgmr.msra.gmra.mrb[62].mxu0 %vm2623_vm3, %v4808_v32 }
 0x226   : > { %3682 = vmatmul.mubr.msk.f32.vlgmr.msra.gmra.mrb[62].mxu1 %vm2623_vm3, %v4808_v32 }
 0x23a   : > { %v2742_v26 = vpop.f32.mrb[56].mxu0 }
 0x23b   : > { %3244 = vst [vmem:[%s5999_s9] sm:$0x1f] %v2742_v26  ;;  %v2744_v33 = vpop.f32.mrb[57].mxu0 }
 0x23c   : > { %3245 = vst [vmem:[%s5999_s9 + $0x8] sm:$0x1f] %v2744_v33 }
 0x23d   : > { %v2813_v36 = vpop.f32.mrb[56].mxu1 }
 0x23e   : > { %3246 = vst [vmem:[%s5999_s9 + $0x10] sm:$0x1f] %v2813_v36  ;;  %v2815_v38 = vpop.f32.mrb[57].mxu1 }
 0x23f   : > { %3247 = vst [vmem:[%s5999_s9 + $0x18] sm:$0x1f] %v2815_v38 }
 0x27a   : > { %v2884_v39 = vpop.f32.mrb[58].mxu0 }
 0x27b   : > { %3248 = vst [vmem:[%s5999_s9 + $0x20] sm:$0x1f] %v2884_v39  ;;  %v2955_v21 = vpop.f32.mrb[58].mxu1  ;;  %v2886_v51 = vpop.f32.mrb[59].mxu0 }
 0x27c   : > { %3250 = vst [vmem:[%s5999_s9 + $0x30] sm:$0x1f] %v2955_v21  ;;  %3249 = vst [vmem:[%s5999_s9 + $0x28] sm:$0x1f] %v2886_v51  ;;  %v2957_v40 = vpop.f32.mrb[59].mxu1 }
 0x27d   : > { %3251 = vst [vmem:[%s5999_s9 + $0x38] sm:$0x1f] %v2957_v40 }
 0x2b9   : > { %v3026_v42 = vpop.f32.mrb[60].mxu0 }
 0x2ba   : > { %3252 = vst [vmem:[%s5999_s9 + $0x40] sm:$0x1f] %v3026_v42  ;;  %v3097_v44 = vpop.f32.mrb[60].mxu1  ;;  %v3028_v45 = vpop.f32.mrb[61].mxu0 }
 0x2bb   : > { %3254 = vst [vmem:[%s5999_s9 + $0x50] sm:$0x1f] %v3097_v44  ;;  %3253 = vst [vmem:[%s5999_s9 + $0x48] sm:$0x1f] %v3028_v45  ;;  %v3099_v46 = vpop.f32.mrb[61].mxu1 }
 0x2bc   : > { %3255 = vst [vmem:[%s5999_s9 + $0x58] sm:$0x1f] %v3099_v46 }
 0x2f5   : > { %3267 = sbr.rel (!%p4939_p5) target bundleno = 791 (0x317), region = 40 }
 0x2f8   : > { %v3168_v56 = vpop.f32.mrb[62].mxu0 }
 0x2f9   : > { %3256 = vst [vmem:[%s5999_s9 + $0x60] sm:$0x1f] %v3168_v56  ;;  %v3239_v60 = vpop.f32.mrb[62].mxu1  ;;  %v3170_v12 = vpop.f32.mrb[63].mxu0 }
 0x2fa   : > { %3258 = vst [vmem:[%s5999_s9 + $0x70] sm:$0x1f] %v3239_v60  ;;  %3257 = vst [vmem:[%s5999_s9 + $0x68] sm:$0x1f] %v3170_v12  ;;  %v3241_v63 = vpop.f32.mrb[63].mxu1 }
 0x2fb   : > { %3259 = vst [vmem:[%s5999_s9 + $0x78] sm:$0x1f] %v3241_v63 }
 0x2fc   : > { %s6090_s12 = smov (!%p3270_p11, %s3269_s12), 16 }
 0x2fd   : > { %s6024_s13 = sshll.u32 %s6090_s12, 7 }
 0x2fe   : > { %s3274_s14 = ssub.s32 2048, %s6024_s13 }
 0x2ff   : > { %3275 = vsyncadd %s6019_s10, %s3274_s14  ;;  %p3686_p12 = scmp.ne.s32.totalorder %s6024_s13, 0  ;;  %s3692_s20 = sshll.u32 %s4922_s19, 11 }
 0x300   : > { %s6033_s23 = scalar_lea.hbm %s6078_s4, %s3692_s20  ;;  %s3281_s27 = sshll.u32 %s5999_s9, 4  ;;  %s3282_s27 = int_to_ptr.vmem [resolvable:$true] %s3281_s27 }
 0x301   : > { %s4809_s28 = scalar_lea.vmem %s3282_s27, %s6024_s13  ;;  %s4875_s7 = smov [#allocation2]  }
 0x302   : > { %p4810_p13 = scmp.ne.s32.totalorder %s3282_s27, %s4809_s28  ;;  %s4813_s29 = sshll.u32 %s4875_s7, 4  ;;  %s4814_s29 = int_to_ptr.vmem [resolvable:$false] %s4813_s29 }
 0x303   : > { %s4815_s30 = scalar_lea.vmem %s4814_s29, 4096  ;;  %p4816_p2 = scmp.lt.s32.totalorder %s3282_s27, %s4814_s29 }
 0x304   : > { %p4811_p0 = pnand %p4810_p13, %p3686_p12  ;;  %p4817_p3 = scmp.lt.s32.totalorder %s4815_s30, %s4809_s28 }
 0x306   : > { %p4812_p1 = pneg %p4811_p0  ;;  %p4818_p4 = por %p4817_p3, %p4816_p2 }
 0x308   : > { %p4819_p5 = pnand %p4818_p4, %p4812_p1 }
 0x30a   : > { %4822 = shalt.err (!%p4819_p5)
}
 0x30b   : > { %s4823_s19 = scalar_lea.hbm %s6033_s23, %s6024_s13  ;;  %s4827_s8 = scalar_lea.hbm %s6078_s4, 3072 }
 0x30c   : > { %p4824_p7 = scmp.ne.s32.totalorder %s6033_s23, %s4823_s19  ;;  %p4828_p10 = scmp.lt.u32.totalorder %s6033_s23, %s6078_s4 }
 0x30d   : > { %p4829_p11 = scmp.lt.u32.totalorder %s4827_s8, %s4823_s19  ;;  %p4831_p0 = scmp.lt.u32.totalorder %s4823_s19, %s6033_s23 }
 0x30e   : > { %p4825_p8 = pnand %p4824_p7, %p3686_p12 }
 0x30f   : > { %p4830_p13 = por %p4829_p11, %p4828_p10 }
 0x310   : > { %p4826_p9 = pneg %p4825_p8 }
 0x311   : > { %p4832_p1 = por %p4831_p0, %p4830_p13 }
 0x313   : > { %p4833_p2 = pnand %p4832_p1, %p4826_p9 }
 0x315   : > { %4836 = shalt.err (!%p4833_p2)
}
 0x316   : > { %3284 = dma.vmem_to_hbm [thread:$0]  (%p3686_p12), %s3282_s27, %s6024_s13, %s6033_s23, %s6019_s10  }
 0x317 PF: > { %p4546_p3 = scmp.ge.s32.totalorder %s4871_s18, 2  ;;  %s3293_s12 = sand.u32 1, %s4859_s15  }
 0x318   : > { %s3294_s14 = scalar_lea.sflag [#allocation3], %s3293_s12 }
 0x319   : > { %p4543_p4 = pnand %p4546_p3, %p4943_p6 }
 0x31b   : > { %4854 = dma.done.wait (!%p4543_p4), %s3294_s14, 2048  }
 0x31c   : > { %4856 = vsyncadd (!%p4543_p4), %s3294_s14, 4294965248  ;;  %p14_p5 = scmp.ge.s32.totalorder %s4926_s21, 4   ;;  %s6083_s15 = smov %s4863_s16 }
 0x31d   : > { %s6084_s16 = smov %s4867_s17  ;;  %s6085_s17 = smov %s4937_s24 }
 0x31e   : > { %s6086_s18 = smov %s4926_s21  ;;  %16 = sbr.rel (!%p14_p5) target bundleno = 3 (0x3), region = 71 }
 0x325   :  { %3299 = vsyncpa [#allocation3], 1 }
 0x326   :  { %3301 = vsyncpa [#allocation3 + $0x1], 1 }

</bundles_post_ra>
